<compile_context>
chip_gen: v5e
topology: v5e:2x2
jax: 0.10.0
libtpu: 0.0.40
codegen_flags: <defaults>
</compile_context>

<pallas_src>
import numpy as np
import jax
import jax.numpy as jnp
from jax.experimental import pallas as pl
from jax.experimental.pallas import tpu as pltpu

BN_EPS = 1e-5
GF_R = 2          # AGF builds GF(r=2, eps=0.01)
GF_EPS = 1e-2
GF_EPSS = 1e-12


# --------------------------- constant spatial operators ----------------------

def _shift_matrices_t(h, w):
    """s[tap] (hw,hw) such that (x_flat @ s[tap])[i*w+j] = x[i+di-1, j+dj-1] (zero pad)."""
    hw = h * w
    s = np.zeros((9, hw, hw), np.float32)
    for di in range(3):
        for dj in range(3):
            tap = di * 3 + dj
            for i in range(h):
                for j in range(w):
                    k, l = i + di - 1, j + dj - 1
                    if 0 <= k < h and 0 <= l < w:
                        s[tap, k * w + l, i * w + j] = 1.0
    return s


def _box_matrix(n, r):
    idx = np.arange(n)
    return (np.abs(idx[:, None] - idx[None, :]) <= r).astype(np.float32)


def _interp_matrix(n_out, n_in):
    """1-D bilinear align_corners=True interpolation weights (n_out, n_in)."""
    m = np.zeros((n_out, n_in), np.float32)
    if n_out == 1:
        m[0, 0] = 1.0
        return m
    scale = (n_in - 1) / (n_out - 1)
    for i in range(n_out):
        src = i * scale
        i0 = min(int(np.floor(src)), n_in - 1)
        i1 = min(i0 + 1, n_in - 1)
        t = src - i0
        m[i, i0] += 1.0 - t
        m[i, i1] += t
    return m


# --------------------------------- kernels -----------------------------------

def _conv3x3(x, s_ref, w_ref):
    """3x3 zero-padded conv on flattened planes via constant shift operators.

    x: (Cin, hw); s_ref: (9, hw, hw) transposed shift operators;
    w_ref: (Cout, 9*Cin) tap-major flattened weights.  Returns (Cout, hw) f32.
    """
    shifted = jnp.concatenate(
        [jnp.dot(x, s_ref[t], preferred_element_type=jnp.float32)
         for t in range(9)], axis=0)                               # (9*Cin, hw)
    return jnp.dot(w_ref[...], shifted, preferred_element_type=jnp.float32)


def _arb_kernel(x_ref, s_ref, w_rb_ref, sb_rb_ref, m_ca_ref,
                w_sa1_ref, b_sa1_ref, w_sa2_ref, b_sa2_ref, y_ref):
    """Fused ARB (lf=False): RB -> CA -> SA for one batch sample."""
    x = x_ref[0]                                              # (C, hw)

    # RB: BasicConv2d(conv3x3 -> folded BN -> ReLU) + residual.
    rb = _conv3x3(x, s_ref, w_rb_ref)
    rb = rb * sb_rb_ref[0] + sb_rb_ref[1]                     # (C,hw)*(C,1)+(C,1)
    rb = jnp.maximum(rb, 0.0) + x

    # CA: adaptive max-pool -> conv1d(k=3) over channels -> sigmoid gate.
    pooled = jnp.max(rb, axis=1, keepdims=True)               # (C, 1)
    gate_c = jax.nn.sigmoid(
        jnp.dot(m_ca_ref[...], pooled, preferred_element_type=jnp.float32))
    ca = rb * gate_c

    # SA: conv3x3(C -> C//4)+ReLU -> conv3x3(C//4 -> 1) -> sigmoid spatial gate.
    h1 = jnp.maximum(_conv3x3(ca, s_ref, w_sa1_ref) + b_sa1_ref[...], 0.0)
    h2 = _conv3x3(h1, s_ref, w_sa2_ref) + b_sa2_ref[...]      # (1, hw)
    y_ref[0] = ca * jax.nn.sigmoid(h2)


def _gf_kernel(hr_ref, lry_ref, la_ref, tall_ref, kdown_ref, kup_ref,
               kboxn_ref, nbox_ref, out_ref):
    """Fused attention-guided filter for one batch sample (f32; reference is f64).

    kboxn_ref already has 1/N folded in, so `x @ kboxn == boxfilter(x)/N`.
    """
    C = hr_ref.shape[1]

    hr = hr_ref[0]                                            # (C, HW)
    lry = lry_ref[0]                                          # (C, hw)
    la = jnp.abs(la_ref[0]) + GF_EPSS                         # (C, hw)
    inv_t = 1.0 / tall_ref[0, 0]                              # 1 / sum(|l_a|+epss)

    nbox = nbox_ref[...]                                      # (1, hw) box counts N
    lrx = jnp.dot(hr, kdown_ref[...],
                  preferred_element_type=jnp.float32)         # lr_x = downsampled guide

    la2x = la * la * lrx                                      # reused three times
    fields = jnp.concatenate(
        [la,                # -> mean_a
         la2x * lry,        # -> mean_a2xy
         la2x * inv_t,      # -> mean_tax  (= l_t*l_a*lr_x)
         la * lry,          # -> mean_ay
         la2x * lrx,        # -> mean_a2x2
         la * lrx],         # -> mean_ax
        axis=0)                                               # (6C, hw)
    means = jnp.dot(fields, kboxn_ref[...],
                    preferred_element_type=jnp.float32)       # boxfilter(.)/N
    mean_a = means[:C]
    mean_a2xy = means[C:2 * C]
    mean_tax = means[2 * C:3 * C]
    mean_ay = means[3 * C:4 * C]
    mean_a2x2 = means[4 * C:5 * C]
    mean_ax = means[5 * C:]

    temp = jnp.abs(mean_a2x2 - nbox * mean_tax * mean_ax)
    A = (mean_a2xy - nbox * mean_tax * mean_ay) / (temp + GF_EPS)
    b = (mean_ay - A * mean_ax) / mean_a

    ab = jnp.dot(jnp.concatenate([A, b], axis=0), kboxn_ref[...],
                 preferred_element_type=jnp.float32)          # (2C, hw) smoothed A|b
    ab_up = jnp.dot(ab, kup_ref[...],
                    preferred_element_type=jnp.float32)       # (2C, HW) single upsample
    out_ref[0] = ab_up[:C] * hr + ab_up[C:]


# -------------------------------- parameters ---------------------------------

def make_agf_params(key, channels):
    c4 = channels // 4
    ks = jax.random.split(key, 10)

    def conv_w(k, cout, cin, ksz):
        return jax.random.normal(k, (cout, cin, ksz, ksz), jnp.float32) / np.sqrt(cin * ksz * ksz)

    return dict(
        rb_w=conv_w(ks[0], channels, channels, 3),
        rb_gamma=1.0 + 0.1 * jax.random.normal(ks[1], (channels,), jnp.float32),
        rb_beta=0.1 * jax.random.normal(ks[2], (channels,), jnp.float32),
        rb_mean=0.1 * jax.random.normal(ks[3], (channels,), jnp.float32),
        rb_var=0.5 + jnp.abs(jax.random.normal(ks[4], (channels,), jnp.float32)),
        ca_w=jax.random.normal(ks[5], (1, 1, 3), jnp.float32) / np.sqrt(3.0),
        sa1_w=conv_w(ks[6], c4, channels, 3),
        sa1_b=0.01 * jax.random.normal(ks[7], (c4,), jnp.float32),
        sa2_w=conv_w(ks[8], 1, c4, 3),
        sa2_b=0.01 * jax.random.normal(ks[9], (1,), jnp.float32),
    )


# --------------------------------- forward -----------------------------------

def agf_forward(params, high_level, low_level):
    N, C, H, W = high_level.shape
    _, _, h, w = low_level.shape
    assert (h, w) == (H // 2, W // 2) and C % 4 == 0
    assert h > 2 * GF_R + 1 and w > 2 * GF_R + 1
    hw, HW = h * w, H * W
    C4 = C // 4

    # Constant spatial operators (trace-time constants, built once).
    s_t = jnp.asarray(_shift_matrices_t(h, w))                        # (9,hw,hw)
    kbox = np.kron(_box_matrix(h, GF_R), _box_matrix(w, GF_R))        # (hw,hw)
    nbox_np = kbox.sum(axis=1, dtype=np.float32).reshape(1, hw)       # box counts N
    kboxn_t = jnp.asarray(kbox.T / nbox_np)                           # box + 1/N folded
    nbox = jnp.asarray(nbox_np)
    kdown_t = jnp.asarray(
        np.kron(_interp_matrix(h, H), _interp_matrix(w, W)).T)        # (HW,hw)
    kup_t = jnp.asarray(
        np.kron(_interp_matrix(H, h), _interp_matrix(W, w)).T)        # (hw,HW)

    # Repack module parameters for the matmul formulation.
    def tapped_flat(wc):  # (Cout,Cin,3,3) -> (Cout, 9*Cin), tap = di*3+dj, tap-major
        cout, cin = wc.shape[0], wc.shape[1]
        return jnp.transpose(wc, (0, 2, 3, 1)).reshape(cout, 9 * cin)

    w_rb = tapped_flat(params['rb_w'])                                # (C, 9C)
    scale = params['rb_gamma'] / jnp.sqrt(params['rb_var'] + BN_EPS)
    bias = params['rb_beta'] - params['rb_mean'] * scale
    sb_rb = jnp.stack([scale, bias]).reshape(2, C, 1)                 # folded BN
    wk = params['ca_w'].reshape(3)
    m_ca = sum(wk[k] * jnp.eye(C, k=k - 1, dtype=jnp.float32) for k in range(3))
    w_sa1 = tapped_flat(params['sa1_w'])                              # (C4, 9C)
    b_sa1 = params['sa1_b'].reshape(C4, 1)
    w_sa2 = tapped_flat(params['sa2_w'])                              # (1, 9*C4)
    b_sa2 = params['sa2_b'].reshape(1, 1)

    # Single layout conversion at the module boundary: (N, C, H*W), lane-dense.
    x_lo = low_level.reshape(N, C, hw)
    x_hi = high_level.reshape(N, C, HW)

    parallel = pltpu.CompilerParams(dimension_semantics=("parallel",))

    # Kernel 1: fused ARB -> l_a of the guided filter.
    la = pl.pallas_call(
        _arb_kernel,
        out_shape=jax.ShapeDtypeStruct((N, C, hw), jnp.float32),
        grid=(N,),
        in_specs=[
            pl.BlockSpec((1, C, hw), lambda n: (n, 0, 0)),            # low_level
            pl.BlockSpec((9, hw, hw), lambda n: (0, 0, 0)),           # tap shifts
            pl.BlockSpec((C, 9 * C), lambda n: (0, 0)),               # RB conv
            pl.BlockSpec((2, C, 1), lambda n: (0, 0, 0)),             # BN scale|bias
            pl.BlockSpec((C, C), lambda n: (0, 0)),                   # CA conv1d
            pl.BlockSpec((C4, 9 * C), lambda n: (0, 0)),              # SA conv1
            pl.BlockSpec((C4, 1), lambda n: (0, 0)),
            pl.BlockSpec((1, 9 * C4), lambda n: (0, 0)),              # SA conv2
            pl.BlockSpec((1, 1), lambda n: (0, 0)),
        ],
        out_specs=pl.BlockSpec((1, C, hw), lambda n: (n, 0, 0)),
        compiler_params=parallel,
    )(x_lo, s_t, w_rb, sb_rb, m_ca, w_sa1, b_sa1, w_sa2, b_sa2)

    # Batch-global normalizer t_all = sum(|l_a| + epss) over the whole batch:
    # computed once here (tiny XLA reduction) instead of per grid-step in VMEM.
    t_all = jnp.sum(jnp.abs(la) + GF_EPSS).reshape(1, 1).astype(jnp.float32)

    # Kernel 2: fused guided filter (downsample + box filters + A/b + upsample).
    out = pl.pallas_call(
        _gf_kernel,
        out_shape=jax.ShapeDtypeStruct((N, C, HW), jnp.float32),
        grid=(N,),
        in_specs=[
            pl.BlockSpec((1, C, HW), lambda n: (n, 0, 0)),            # hr_x
            pl.BlockSpec((1, C, hw), lambda n: (n, 0, 0)),            # lr_y
            pl.BlockSpec((1, C, hw), lambda n: (n, 0, 0)),            # l_a (per sample)
            pl.BlockSpec((1, 1), lambda n: (0, 0)),                   # t_all
            pl.BlockSpec((HW, hw), lambda n: (0, 0)),                 # bilinear down
            pl.BlockSpec((hw, HW), lambda n: (0, 0)),                 # bilinear up
            pl.BlockSpec((hw, hw), lambda n: (0, 0)),                 # box filter /N
            pl.BlockSpec((1, hw), lambda n: (0, 0)),                  # box counts N
        ],
        out_specs=pl.BlockSpec((1, C, HW), lambda n: (n, 0, 0)),
        compiler_params=parallel,
    )(x_hi, x_lo, la, t_all, kdown_t, kup_t, kboxn_t, nbox)

    return out.reshape(N, C, H, W)


# ----------------------------------- main -------------------------------------

if __name__ == "__main__":
    N, C, H, W = 2, 8, 16, 16
    key = jax.random.PRNGKey(0)
    kp, khi, klo = jax.random.split(key, 3)

    params = make_agf_params(kp, C)
    high_level = jax.random.normal(khi, (N, C, H, W), jnp.float32)
    low_level = jax.random.normal(klo, (N, C, H // 2, W // 2), jnp.float32)

    out = jax.jit(agf_forward)(params, high_level, low_level)
    jax.block_until_ready(out)
    assert out.shape == (N, C, H, W)
    assert bool(jnp.all(jnp.isfinite(out)))
    print("KERNEL_OK")
</pallas_src>

<mosaic_0001>
module attributes {stable_mosaic.version = 11 : i64} {
  func.func @_arb_kernel(%arg0: i32, %arg1: memref<1x8x64xf32, #tpu.memory_space<vmem>>, %arg2: memref<9x64x64xf32, #tpu.memory_space<vmem>>, %arg3: memref<8x72xf32, #tpu.memory_space<vmem>>, %arg4: memref<2x8x1xf32, #tpu.memory_space<vmem>>, %arg5: memref<8x8xf32, #tpu.memory_space<vmem>>, %arg6: memref<2x72xf32, #tpu.memory_space<vmem>>, %arg7: memref<2x1xf32, #tpu.memory_space<vmem>>, %arg8: memref<1x18xf32, #tpu.memory_space<vmem>>, %arg9: memref<1x1xf32, #tpu.memory_space<vmem>>, %arg10: memref<1x8x64xf32, #tpu.memory_space<vmem>>) attributes {dimension_semantics = [#tpu.dimension_semantics<parallel>], iteration_bounds = array<i64: 2>, scalar_prefetch = 0 : i64, scratch_operands = 0 : i64, tpu.core_type = #tpu.core_type<tc>, window_params = [{transform_indices = @transform_0, window_bounds = array<i64: 1, 8, 64>}, {pipeline_mode = #tpu.pipeline_mode<synchronous>, transform_indices = @transform_1, window_bounds = array<i64: 9, 64, 64>}, {pipeline_mode = #tpu.pipeline_mode<synchronous>, transform_indices = @transform_2, window_bounds = array<i64: 8, 72>}, {pipeline_mode = #tpu.pipeline_mode<synchronous>, transform_indices = @transform_3, window_bounds = array<i64: 2, 8, 1>}, {pipeline_mode = #tpu.pipeline_mode<synchronous>, transform_indices = @transform_4, window_bounds = array<i64: 8, 8>}, {pipeline_mode = #tpu.pipeline_mode<synchronous>, transform_indices = @transform_5, window_bounds = array<i64: 2, 72>}, {pipeline_mode = #tpu.pipeline_mode<synchronous>, transform_indices = @transform_6, window_bounds = array<i64: 2, 1>}, {pipeline_mode = #tpu.pipeline_mode<synchronous>, transform_indices = @transform_7, window_bounds = array<i64: 1, 18>}, {pipeline_mode = #tpu.pipeline_mode<synchronous>, transform_indices = @transform_8, window_bounds = array<i64: 1, 1>}, {transform_indices = @transform_9, window_bounds = array<i64: 1, 8, 64>}]} {
    %c0 = arith.constant 0 : index
    %c0_0 = arith.constant 0 : index
    %c0_1 = arith.constant 0 : index
    %0 = vector.load %arg1[%c0, %c0_0, %c0_1] : memref<1x8x64xf32, #tpu.memory_space<vmem>>, vector<1x8x64xf32>
    %1 = vector.shape_cast %0 : vector<1x8x64xf32> to vector<8x64xf32>
    %c0_2 = arith.constant 0 : index
    %c0_3 = arith.constant 0 : index
    %c0_4 = arith.constant 0 : index
    %2 = vector.load %arg2[%c0_2, %c0_3, %c0_4] : memref<9x64x64xf32, #tpu.memory_space<vmem>>, vector<1x64x64xf32>
    %3 = vector.shape_cast %2 : vector<1x64x64xf32> to vector<64x64xf32>
    %cst = arith.constant dense<0.000000e+00> : vector<8x64xf32>
    %4 = tpu.matmul %1, %3, %cst {dimension_numbers = #tpu.dot_dimension_numbers<[1], [0], [0], [1], [0, 0, 1, 1], [], []>} : vector<8x64xf32>, vector<64x64xf32>, vector<8x64xf32> -> vector<8x64xf32>
    %c1 = arith.constant 1 : index
    %c0_5 = arith.constant 0 : index
    %c0_6 = arith.constant 0 : index
    %5 = vector.load %arg2[%c1, %c0_5, %c0_6] : memref<9x64x64xf32, #tpu.memory_space<vmem>>, vector<1x64x64xf32>
    %6 = vector.shape_cast %5 : vector<1x64x64xf32> to vector<64x64xf32>
    %cst_7 = arith.constant dense<0.000000e+00> : vector<8x64xf32>
    %7 = tpu.matmul %1, %6, %cst_7 {dimension_numbers = #tpu.dot_dimension_numbers<[1], [0], [0], [1], [0, 0, 1, 1], [], []>} : vector<8x64xf32>, vector<64x64xf32>, vector<8x64xf32> -> vector<8x64xf32>
    %c2 = arith.constant 2 : index
    %c0_8 = arith.constant 0 : index
    %c0_9 = arith.constant 0 : index
    %8 = vector.load %arg2[%c2, %c0_8, %c0_9] : memref<9x64x64xf32, #tpu.memory_space<vmem>>, vector<1x64x64xf32>
    %9 = vector.shape_cast %8 : vector<1x64x64xf32> to vector<64x64xf32>
    %cst_10 = arith.constant dense<0.000000e+00> : vector<8x64xf32>
    %10 = tpu.matmul %1, %9, %cst_10 {dimension_numbers = #tpu.dot_dimension_numbers<[1], [0], [0], [1], [0, 0, 1, 1], [], []>} : vector<8x64xf32>, vector<64x64xf32>, vector<8x64xf32> -> vector<8x64xf32>
    %c3 = arith.constant 3 : index
    %c0_11 = arith.constant 0 : index
    %c0_12 = arith.constant 0 : index
    %11 = vector.load %arg2[%c3, %c0_11, %c0_12] : memref<9x64x64xf32, #tpu.memory_space<vmem>>, vector<1x64x64xf32>
    %12 = vector.shape_cast %11 : vector<1x64x64xf32> to vector<64x64xf32>
    %cst_13 = arith.constant dense<0.000000e+00> : vector<8x64xf32>
    %13 = tpu.matmul %1, %12, %cst_13 {dimension_numbers = #tpu.dot_dimension_numbers<[1], [0], [0], [1], [0, 0, 1, 1], [], []>} : vector<8x64xf32>, vector<64x64xf32>, vector<8x64xf32> -> vector<8x64xf32>
    %c4 = arith.constant 4 : index
    %c0_14 = arith.constant 0 : index
    %c0_15 = arith.constant 0 : index
    %14 = vector.load %arg2[%c4, %c0_14, %c0_15] : memref<9x64x64xf32, #tpu.memory_space<vmem>>, vector<1x64x64xf32>
    %15 = vector.shape_cast %14 : vector<1x64x64xf32> to vector<64x64xf32>
    %cst_16 = arith.constant dense<0.000000e+00> : vector<8x64xf32>
    %16 = tpu.matmul %1, %15, %cst_16 {dimension_numbers = #tpu.dot_dimension_numbers<[1], [0], [0], [1], [0, 0, 1, 1], [], []>} : vector<8x64xf32>, vector<64x64xf32>, vector<8x64xf32> -> vector<8x64xf32>
    %c5 = arith.constant 5 : index
    %c0_17 = arith.constant 0 : index
    %c0_18 = arith.constant 0 : index
    %17 = vector.load %arg2[%c5, %c0_17, %c0_18] : memref<9x64x64xf32, #tpu.memory_space<vmem>>, vector<1x64x64xf32>
    %18 = vector.shape_cast %17 : vector<1x64x64xf32> to vector<64x64xf32>
    %cst_19 = arith.constant dense<0.000000e+00> : vector<8x64xf32>
    %19 = tpu.matmul %1, %18, %cst_19 {dimension_numbers = #tpu.dot_dimension_numbers<[1], [0], [0], [1], [0, 0, 1, 1], [], []>} : vector<8x64xf32>, vector<64x64xf32>, vector<8x64xf32> -> vector<8x64xf32>
    %c6 = arith.constant 6 : index
    %c0_20 = arith.constant 0 : index
    %c0_21 = arith.constant 0 : index
    %20 = vector.load %arg2[%c6, %c0_20, %c0_21] : memref<9x64x64xf32, #tpu.memory_space<vmem>>, vector<1x64x64xf32>
    %21 = vector.shape_cast %20 : vector<1x64x64xf32> to vector<64x64xf32>
    %cst_22 = arith.constant dense<0.000000e+00> : vector<8x64xf32>
    %22 = tpu.matmul %1, %21, %cst_22 {dimension_numbers = #tpu.dot_dimension_numbers<[1], [0], [0], [1], [0, 0, 1, 1], [], []>} : vector<8x64xf32>, vector<64x64xf32>, vector<8x64xf32> -> vector<8x64xf32>
    %c7 = arith.constant 7 : index
    %c0_23 = arith.constant 0 : index
    %c0_24 = arith.constant 0 : index
    %23 = vector.load %arg2[%c7, %c0_23, %c0_24] : memref<9x64x64xf32, #tpu.memory_space<vmem>>, vector<1x64x64xf32>
    %24 = vector.shape_cast %23 : vector<1x64x64xf32> to vector<64x64xf32>
    %cst_25 = arith.constant dense<0.000000e+00> : vector<8x64xf32>
    %25 = tpu.matmul %1, %24, %cst_25 {dimension_numbers = #tpu.dot_dimension_numbers<[1], [0], [0], [1], [0, 0, 1, 1], [], []>} : vector<8x64xf32>, vector<64x64xf32>, vector<8x64xf32> -> vector<8x64xf32>
    %c8 = arith.constant 8 : index
    %c0_26 = arith.constant 0 : index
    %c0_27 = arith.constant 0 : index
    %26 = vector.load %arg2[%c8, %c0_26, %c0_27] : memref<9x64x64xf32, #tpu.memory_space<vmem>>, vector<1x64x64xf32>
    %27 = vector.shape_cast %26 : vector<1x64x64xf32> to vector<64x64xf32>
    %cst_28 = arith.constant dense<0.000000e+00> : vector<8x64xf32>
    %28 = tpu.matmul %1, %27, %cst_28 {dimension_numbers = #tpu.dot_dimension_numbers<[1], [0], [0], [1], [0, 0, 1, 1], [], []>} : vector<8x64xf32>, vector<64x64xf32>, vector<8x64xf32> -> vector<8x64xf32>
    %29 = tpu.concatenate %4, %7, %10, %13, %16, %19, %22, %25, %28 in 0 : vector<8x64xf32>, vector<8x64xf32>, vector<8x64xf32>, vector<8x64xf32>, vector<8x64xf32>, vector<8x64xf32>, vector<8x64xf32>, vector<8x64xf32>, vector<8x64xf32> -> vector<72x64xf32>
    %c0_29 = arith.constant 0 : index
    %c0_30 = arith.constant 0 : index
    %30 = vector.load %arg3[%c0_29, %c0_30] : memref<8x72xf32, #tpu.memory_space<vmem>>, vector<8x72xf32>
    %cst_31 = arith.constant dense<0.000000e+00> : vector<8x64xf32>
    %31 = tpu.matmul %30, %29, %cst_31 {dimension_numbers = #tpu.dot_dimension_numbers<[1], [0], [0], [1], [0, 0, 1, 1], [], []>} : vector<8x72xf32>, vector<72x64xf32>, vector<8x64xf32> -> vector<8x64xf32>
    %c0_32 = arith.constant 0 : index
    %c0_33 = arith.constant 0 : index
    %c0_34 = arith.constant 0 : index
    %32 = vector.load %arg4[%c0_32, %c0_33, %c0_34] : memref<2x8x1xf32, #tpu.memory_space<vmem>>, vector<1x8x1xf32>
    %33 = vector.shape_cast %32 : vector<1x8x1xf32> to vector<8x1xf32>
    %34 = vector.broadcast %33 : vector<8x1xf32> to vector<8x64xf32>
    %35 = arith.mulf %31, %34 : vector<8x64xf32>
    %c1_35 = arith.constant 1 : index
    %c0_36 = arith.constant 0 : index
    %c0_37 = arith.constant 0 : index
    %36 = vector.load %arg4[%c1_35, %c0_36, %c0_37] : memref<2x8x1xf32, #tpu.memory_space<vmem>>, vector<1x8x1xf32>
    %37 = vector.shape_cast %36 : vector<1x8x1xf32> to vector<8x1xf32>
    %38 = vector.broadcast %37 : vector<8x1xf32> to vector<8x64xf32>
    %39 = arith.addf %35, %38 : vector<8x64xf32>
    %cst_38 = arith.constant 0.000000e+00 : f32
    %40 = vector.broadcast %cst_38 : f32 to vector<8x64xf32>
    %41 = arith.maximumf %39, %40 : vector<8x64xf32>
    %42 = arith.addf %41, %1 : vector<8x64xf32>
    %cst_39 = arith.constant dense<0xFF800000> : vector<8xf32>
    %43 = vector.multi_reduction <maximumf>, %42, %cst_39 [1] : vector<8x64xf32> to vector<8xf32>
    %44 = vector.shape_cast %43 : vector<8xf32> to vector<8x1xf32>
    %c0_40 = arith.constant 0 : index
    %c0_41 = arith.constant 0 : index
    %45 = vector.load %arg5[%c0_40, %c0_41] : memref<8x8xf32, #tpu.memory_space<vmem>>, vector<8x8xf32>
    %cst_42 = arith.constant dense<0.000000e+00> : vector<8x1xf32>
    %46 = tpu.matmul %45, %44, %cst_42 {dimension_numbers = #tpu.dot_dimension_numbers<[1], [0], [0], [1], [0, 0, 1, 1], [], []>} : vector<8x8xf32>, vector<8x1xf32>, vector<8x1xf32> -> vector<8x1xf32>
    %47 = arith.negf %46 : vector<8x1xf32>
    %48 = math.exp %47 : vector<8x1xf32>
    %cst_43 = arith.constant 1.000000e+00 : f32
    %49 = vector.broadcast %cst_43 : f32 to vector<8x1xf32>
    %50 = arith.addf %49, %48 : vector<8x1xf32>
    %51 = arith.divf %49, %50 : vector<8x1xf32>
    %52 = vector.broadcast %51 : vector<8x1xf32> to vector<8x64xf32>
    %53 = arith.mulf %42, %52 : vector<8x64xf32>
    %c0_44 = arith.constant 0 : index
    %c0_45 = arith.constant 0 : index
    %c0_46 = arith.constant 0 : index
    %54 = vector.load %arg2[%c0_44, %c0_45, %c0_46] : memref<9x64x64xf32, #tpu.memory_space<vmem>>, vector<1x64x64xf32>
    %55 = vector.shape_cast %54 : vector<1x64x64xf32> to vector<64x64xf32>
    %cst_47 = arith.constant dense<0.000000e+00> : vector<8x64xf32>
    %56 = tpu.matmul %53, %55, %cst_47 {dimension_numbers = #tpu.dot_dimension_numbers<[1], [0], [0], [1], [0, 0, 1, 1], [], []>} : vector<8x64xf32>, vector<64x64xf32>, vector<8x64xf32> -> vector<8x64xf32>
    %c1_48 = arith.constant 1 : index
    %c0_49 = arith.constant 0 : index
    %c0_50 = arith.constant 0 : index
    %57 = vector.load %arg2[%c1_48, %c0_49, %c0_50] : memref<9x64x64xf32, #tpu.memory_space<vmem>>, vector<1x64x64xf32>
    %58 = vector.shape_cast %57 : vector<1x64x64xf32> to vector<64x64xf32>
    %cst_51 = arith.constant dense<0.000000e+00> : vector<8x64xf32>
    %59 = tpu.matmul %53, %58, %cst_51 {dimension_numbers = #tpu.dot_dimension_numbers<[1], [0], [0], [1], [0, 0, 1, 1], [], []>} : vector<8x64xf32>, vector<64x64xf32>, vector<8x64xf32> -> vector<8x64xf32>
    %c2_52 = arith.constant 2 : index
    %c0_53 = arith.constant 0 : index
    %c0_54 = arith.constant 0 : index
    %60 = vector.load %arg2[%c2_52, %c0_53, %c0_54] : memref<9x64x64xf32, #tpu.memory_space<vmem>>, vector<1x64x64xf32>
    %61 = vector.shape_cast %60 : vector<1x64x64xf32> to vector<64x64xf32>
    %cst_55 = arith.constant dense<0.000000e+00> : vector<8x64xf32>
    %62 = tpu.matmul %53, %61, %cst_55 {dimension_numbers = #tpu.dot_dimension_numbers<[1], [0], [0], [1], [0, 0, 1, 1], [], []>} : vector<8x64xf32>, vector<64x64xf32>, vector<8x64xf32> -> vector<8x64xf32>
    %c3_56 = arith.constant 3 : index
    %c0_57 = arith.constant 0 : index
    %c0_58 = arith.constant 0 : index
    %63 = vector.load %arg2[%c3_56, %c0_57, %c0_58] : memref<9x64x64xf32, #tpu.memory_space<vmem>>, vector<1x64x64xf32>
    %64 = vector.shape_cast %63 : vector<1x64x64xf32> to vector<64x64xf32>
    %cst_59 = arith.constant dense<0.000000e+00> : vector<8x64xf32>
    %65 = tpu.matmul %53, %64, %cst_59 {dimension_numbers = #tpu.dot_dimension_numbers<[1], [0], [0], [1], [0, 0, 1, 1], [], []>} : vector<8x64xf32>, vector<64x64xf32>, vector<8x64xf32> -> vector<8x64xf32>
    %c4_60 = arith.constant 4 : index
    %c0_61 = arith.constant 0 : index
    %c0_62 = arith.constant 0 : index
    %66 = vector.load %arg2[%c4_60, %c0_61, %c0_62] : memref<9x64x64xf32, #tpu.memory_space<vmem>>, vector<1x64x64xf32>
    %67 = vector.shape_cast %66 : vector<1x64x64xf32> to vector<64x64xf32>
    %cst_63 = arith.constant dense<0.000000e+00> : vector<8x64xf32>
    %68 = tpu.matmul %53, %67, %cst_63 {dimension_numbers = #tpu.dot_dimension_numbers<[1], [0], [0], [1], [0, 0, 1, 1], [], []>} : vector<8x64xf32>, vector<64x64xf32>, vector<8x64xf32> -> vector<8x64xf32>
    %c5_64 = arith.constant 5 : index
    %c0_65 = arith.constant 0 : index
    %c0_66 = arith.constant 0 : index
    %69 = vector.load %arg2[%c5_64, %c0_65, %c0_66] : memref<9x64x64xf32, #tpu.memory_space<vmem>>, vector<1x64x64xf32>
    %70 = vector.shape_cast %69 : vector<1x64x64xf32> to vector<64x64xf32>
    %cst_67 = arith.constant dense<0.000000e+00> : vector<8x64xf32>
    %71 = tpu.matmul %53, %70, %cst_67 {dimension_numbers = #tpu.dot_dimension_numbers<[1], [0], [0], [1], [0, 0, 1, 1], [], []>} : vector<8x64xf32>, vector<64x64xf32>, vector<8x64xf32> -> vector<8x64xf32>
    %c6_68 = arith.constant 6 : index
    %c0_69 = arith.constant 0 : index
    %c0_70 = arith.constant 0 : index
    %72 = vector.load %arg2[%c6_68, %c0_69, %c0_70] : memref<9x64x64xf32, #tpu.memory_space<vmem>>, vector<1x64x64xf32>
    %73 = vector.shape_cast %72 : vector<1x64x64xf32> to vector<64x64xf32>
    %cst_71 = arith.constant dense<0.000000e+00> : vector<8x64xf32>
    %74 = tpu.matmul %53, %73, %cst_71 {dimension_numbers = #tpu.dot_dimension_numbers<[1], [0], [0], [1], [0, 0, 1, 1], [], []>} : vector<8x64xf32>, vector<64x64xf32>, vector<8x64xf32> -> vector<8x64xf32>
    %c7_72 = arith.constant 7 : index
    %c0_73 = arith.constant 0 : index
    %c0_74 = arith.constant 0 : index
    %75 = vector.load %arg2[%c7_72, %c0_73, %c0_74] : memref<9x64x64xf32, #tpu.memory_space<vmem>>, vector<1x64x64xf32>
    %76 = vector.shape_cast %75 : vector<1x64x64xf32> to vector<64x64xf32>
    %cst_75 = arith.constant dense<0.000000e+00> : vector<8x64xf32>
    %77 = tpu.matmul %53, %76, %cst_75 {dimension_numbers = #tpu.dot_dimension_numbers<[1], [0], [0], [1], [0, 0, 1, 1], [], []>} : vector<8x64xf32>, vector<64x64xf32>, vector<8x64xf32> -> vector<8x64xf32>
    %c8_76 = arith.constant 8 : index
    %c0_77 = arith.constant 0 : index
    %c0_78 = arith.constant 0 : index
    %78 = vector.load %arg2[%c8_76, %c0_77, %c0_78] : memref<9x64x64xf32, #tpu.memory_space<vmem>>, vector<1x64x64xf32>
    %79 = vector.shape_cast %78 : vector<1x64x64xf32> to vector<64x64xf32>
    %cst_79 = arith.constant dense<0.000000e+00> : vector<8x64xf32>
    %80 = tpu.matmul %53, %79, %cst_79 {dimension_numbers = #tpu.dot_dimension_numbers<[1], [0], [0], [1], [0, 0, 1, 1], [], []>} : vector<8x64xf32>, vector<64x64xf32>, vector<8x64xf32> -> vector<8x64xf32>
    %81 = tpu.concatenate %56, %59, %62, %65, %68, %71, %74, %77, %80 in 0 : vector<8x64xf32>, vector<8x64xf32>, vector<8x64xf32>, vector<8x64xf32>, vector<8x64xf32>, vector<8x64xf32>, vector<8x64xf32>, vector<8x64xf32>, vector<8x64xf32> -> vector<72x64xf32>
    %c0_80 = arith.constant 0 : index
    %c0_81 = arith.constant 0 : index
    %82 = vector.load %arg6[%c0_80, %c0_81] : memref<2x72xf32, #tpu.memory_space<vmem>>, vector<2x72xf32>
    %cst_82 = arith.constant dense<0.000000e+00> : vector<2x64xf32>
    %83 = tpu.matmul %82, %81, %cst_82 {dimension_numbers = #tpu.dot_dimension_numbers<[1], [0], [0], [1], [0, 0, 1, 1], [], []>} : vector<2x72xf32>, vector<72x64xf32>, vector<2x64xf32> -> vector<2x64xf32>
    %c0_83 = arith.constant 0 : index
    %c0_84 = arith.constant 0 : index
    %84 = vector.load %arg7[%c0_83, %c0_84] : memref<2x1xf32, #tpu.memory_space<vmem>>, vector<2x1xf32>
    %85 = vector.broadcast %84 : vector<2x1xf32> to vector<2x64xf32>
    %86 = arith.addf %83, %85 : vector<2x64xf32>
    %cst_85 = arith.constant 0.000000e+00 : f32
    %87 = vector.broadcast %cst_85 : f32 to vector<2x64xf32>
    %88 = arith.maximumf %86, %87 : vector<2x64xf32>
    %c0_86 = arith.constant 0 : index
    %c0_87 = arith.constant 0 : index
    %c0_88 = arith.constant 0 : index
    %89 = vector.load %arg2[%c0_86, %c0_87, %c0_88] : memref<9x64x64xf32, #tpu.memory_space<vmem>>, vector<1x64x64xf32>
    %90 = vector.shape_cast %89 : vector<1x64x64xf32> to vector<64x64xf32>
    %cst_89 = arith.constant dense<0.000000e+00> : vector<2x64xf32>
    %91 = tpu.matmul %88, %90, %cst_89 {dimension_numbers = #tpu.dot_dimension_numbers<[1], [0], [0], [1], [0, 0, 1, 1], [], []>} : vector<2x64xf32>, vector<64x64xf32>, vector<2x64xf32> -> vector<2x64xf32>
    %c1_90 = arith.constant 1 : index
    %c0_91 = arith.constant 0 : index
    %c0_92 = arith.constant 0 : index
    %92 = vector.load %arg2[%c1_90, %c0_91, %c0_92] : memref<9x64x64xf32, #tpu.memory_space<vmem>>, vector<1x64x64xf32>
    %93 = vector.shape_cast %92 : vector<1x64x64xf32> to vector<64x64xf32>
    %cst_93 = arith.constant dense<0.000000e+00> : vector<2x64xf32>
    %94 = tpu.matmul %88, %93, %cst_93 {dimension_numbers = #tpu.dot_dimension_numbers<[1], [0], [0], [1], [0, 0, 1, 1], [], []>} : vector<2x64xf32>, vector<64x64xf32>, vector<2x64xf32> -> vector<2x64xf32>
    %c2_94 = arith.constant 2 : index
    %c0_95 = arith.constant 0 : index
    %c0_96 = arith.constant 0 : index
    %95 = vector.load %arg2[%c2_94, %c0_95, %c0_96] : memref<9x64x64xf32, #tpu.memory_space<vmem>>, vector<1x64x64xf32>
    %96 = vector.shape_cast %95 : vector<1x64x64xf32> to vector<64x64xf32>
    %cst_97 = arith.constant dense<0.000000e+00> : vector<2x64xf32>
    %97 = tpu.matmul %88, %96, %cst_97 {dimension_numbers = #tpu.dot_dimension_numbers<[1], [0], [0], [1], [0, 0, 1, 1], [], []>} : vector<2x64xf32>, vector<64x64xf32>, vector<2x64xf32> -> vector<2x64xf32>
    %c3_98 = arith.constant 3 : index
    %c0_99 = arith.constant 0 : index
    %c0_100 = arith.constant 0 : index
    %98 = vector.load %arg2[%c3_98, %c0_99, %c0_100] : memref<9x64x64xf32, #tpu.memory_space<vmem>>, vector<1x64x64xf32>
    %99 = vector.shape_cast %98 : vector<1x64x64xf32> to vector<64x64xf32>
    %cst_101 = arith.constant dense<0.000000e+00> : vector<2x64xf32>
    %100 = tpu.matmul %88, %99, %cst_101 {dimension_numbers = #tpu.dot_dimension_numbers<[1], [0], [0], [1], [0, 0, 1, 1], [], []>} : vector<2x64xf32>, vector<64x64xf32>, vector<2x64xf32> -> vector<2x64xf32>
    %c4_102 = arith.constant 4 : index
    %c0_103 = arith.constant 0 : index
    %c0_104 = arith.constant 0 : index
    %101 = vector.load %arg2[%c4_102, %c0_103, %c0_104] : memref<9x64x64xf32, #tpu.memory_space<vmem>>, vector<1x64x64xf32>
    %102 = vector.shape_cast %101 : vector<1x64x64xf32> to vector<64x64xf32>
    %cst_105 = arith.constant dense<0.000000e+00> : vector<2x64xf32>
    %103 = tpu.matmul %88, %102, %cst_105 {dimension_numbers = #tpu.dot_dimension_numbers<[1], [0], [0], [1], [0, 0, 1, 1], [], []>} : vector<2x64xf32>, vector<64x64xf32>, vector<2x64xf32> -> vector<2x64xf32>
    %c5_106 = arith.constant 5 : index
    %c0_107 = arith.constant 0 : index
    %c0_108 = arith.constant 0 : index
    %104 = vector.load %arg2[%c5_106, %c0_107, %c0_108] : memref<9x64x64xf32, #tpu.memory_space<vmem>>, vector<1x64x64xf32>
    %105 = vector.shape_cast %104 : vector<1x64x64xf32> to vector<64x64xf32>
    %cst_109 = arith.constant dense<0.000000e+00> : vector<2x64xf32>
    %106 = tpu.matmul %88, %105, %cst_109 {dimension_numbers = #tpu.dot_dimension_numbers<[1], [0], [0], [1], [0, 0, 1, 1], [], []>} : vector<2x64xf32>, vector<64x64xf32>, vector<2x64xf32> -> vector<2x64xf32>
    %c6_110 = arith.constant 6 : index
    %c0_111 = arith.constant 0 : index
    %c0_112 = arith.constant 0 : index
    %107 = vector.load %arg2[%c6_110, %c0_111, %c0_112] : memref<9x64x64xf32, #tpu.memory_space<vmem>>, vector<1x64x64xf32>
    %108 = vector.shape_cast %107 : vector<1x64x64xf32> to vector<64x64xf32>
    %cst_113 = arith.constant dense<0.000000e+00> : vector<2x64xf32>
    %109 = tpu.matmul %88, %108, %cst_113 {dimension_numbers = #tpu.dot_dimension_numbers<[1], [0], [0], [1], [0, 0, 1, 1], [], []>} : vector<2x64xf32>, vector<64x64xf32>, vector<2x64xf32> -> vector<2x64xf32>
    %c7_114 = arith.constant 7 : index
    %c0_115 = arith.constant 0 : index
    %c0_116 = arith.constant 0 : index
    %110 = vector.load %arg2[%c7_114, %c0_115, %c0_116] : memref<9x64x64xf32, #tpu.memory_space<vmem>>, vector<1x64x64xf32>
    %111 = vector.shape_cast %110 : vector<1x64x64xf32> to vector<64x64xf32>
    %cst_117 = arith.constant dense<0.000000e+00> : vector<2x64xf32>
    %112 = tpu.matmul %88, %111, %cst_117 {dimension_numbers = #tpu.dot_dimension_numbers<[1], [0], [0], [1], [0, 0, 1, 1], [], []>} : vector<2x64xf32>, vector<64x64xf32>, vector<2x64xf32> -> vector<2x64xf32>
    %c8_118 = arith.constant 8 : index
    %c0_119 = arith.constant 0 : index
    %c0_120 = arith.constant 0 : index
    %113 = vector.load %arg2[%c8_118, %c0_119, %c0_120] : memref<9x64x64xf32, #tpu.memory_space<vmem>>, vector<1x64x64xf32>
    %114 = vector.shape_cast %113 : vector<1x64x64xf32> to vector<64x64xf32>
    %cst_121 = arith.constant dense<0.000000e+00> : vector<2x64xf32>
    %115 = tpu.matmul %88, %114, %cst_121 {dimension_numbers = #tpu.dot_dimension_numbers<[1], [0], [0], [1], [0, 0, 1, 1], [], []>} : vector<2x64xf32>, vector<64x64xf32>, vector<2x64xf32> -> vector<2x64xf32>
    %116 = tpu.concatenate %91, %94, %97, %100, %103, %106, %109, %112, %115 in 0 : vector<2x64xf32>, vector<2x64xf32>, vector<2x64xf32>, vector<2x64xf32>, vector<2x64xf32>, vector<2x64xf32>, vector<2x64xf32>, vector<2x64xf32>, vector<2x64xf32> -> vector<18x64xf32>
    %c0_122 = arith.constant 0 : index
    %c0_123 = arith.constant 0 : index
    %117 = vector.load %arg8[%c0_122, %c0_123] : memref<1x18xf32, #tpu.memory_space<vmem>>, vector<1x18xf32>
    %cst_124 = arith.constant dense<0.000000e+00> : vector<1x64xf32>
    %118 = tpu.matmul %117, %116, %cst_124 {dimension_numbers = #tpu.dot_dimension_numbers<[1], [0], [0], [1], [0, 0, 1, 1], [], []>} : vector<1x18xf32>, vector<18x64xf32>, vector<1x64xf32> -> vector<1x64xf32>
    %c0_125 = arith.constant 0 : index
    %c0_126 = arith.constant 0 : index
    %119 = vector.load %arg9[%c0_125, %c0_126] : memref<1x1xf32, #tpu.memory_space<vmem>>, vector<1x1xf32>
    %120 = vector.broadcast %119 : vector<1x1xf32> to vector<1x64xf32>
    %121 = arith.addf %118, %120 : vector<1x64xf32>
    %122 = arith.negf %121 : vector<1x64xf32>
    %123 = math.exp %122 : vector<1x64xf32>
    %cst_127 = arith.constant 1.000000e+00 : f32
    %124 = vector.broadcast %cst_127 : f32 to vector<1x64xf32>
    %125 = arith.addf %124, %123 : vector<1x64xf32>
    %126 = arith.divf %124, %125 : vector<1x64xf32>
    %127 = vector.broadcast %126 : vector<1x64xf32> to vector<8x64xf32>
    %128 = arith.mulf %53, %127 : vector<8x64xf32>
    %c0_128 = arith.constant 0 : index
    %c0_129 = arith.constant 0 : index
    %c0_130 = arith.constant 0 : index
    %129 = vector.load %arg10[%c0_128, %c0_129, %c0_130] : memref<1x8x64xf32, #tpu.memory_space<vmem>>, vector<1x8x64xf32>
    %130 = vector.shape_cast %129 : vector<1x8x64xf32> to vector<8x64xf32>
    %131 = vector.shape_cast %128 : vector<8x64xf32> to vector<1x8x64xf32>
    tpu.vector_store %arg10[%c0_128, %c0_129, %c0_130], %131 {strides = array<i32>} : memref<1x8x64xf32, #tpu.memory_space<vmem>>, vector<1x8x64xf32>,
    return
  }
  func.func @transform_0(%arg0: i32) -> (i32, i32, i32) {
    %c0_i32 = arith.constant 0 : i32
    %c0_i32_0 = arith.constant 0 : i32
    %c0_i32_1 = arith.constant 0 : i32
    return %arg0, %c0_i32, %c0_i32_0 : i32, i32, i32
  }
  func.func @transform_1(%arg0: i32) -> (i32, i32, i32) {
    %c0_i32 = arith.constant 0 : i32
    %c0_i32_0 = arith.constant 0 : i32
    %c0_i32_1 = arith.constant 0 : i32
    %c0_i32_2 = arith.constant 0 : i32
    return %c0_i32, %c0_i32_0, %c0_i32_1 : i32, i32, i32
  }
  func.func @transform_2(%arg0: i32) -> (i32, i32) {
    %c0_i32 = arith.constant 0 : i32
    %c0_i32_0 = arith.constant 0 : i32
    %c0_i32_1 = arith.constant 0 : i32
    return %c0_i32, %c0_i32_0 : i32, i32
  }
  func.func @transform_3(%arg0: i32) -> (i32, i32, i32) {
    %c0_i32 = arith.constant 0 : i32
    %c0_i32_0 = arith.constant 0 : i32
    %c0_i32_1 = arith.constant 0 : i32
    %c0_i32_2 = arith.constant 0 : i32
    return %c0_i32, %c0_i32_0, %c0_i32_1 : i32, i32, i32
  }
  func.func @transform_4(%arg0: i32) -> (i32, i32) {
    %c0_i32 = arith.constant 0 : i32
    %c0_i32_0 = arith.constant 0 : i32
    %c0_i32_1 = arith.constant 0 : i32
    return %c0_i32, %c0_i32_0 : i32, i32
  }
  func.func @transform_5(%arg0: i32) -> (i32, i32) {
    %c0_i32 = arith.constant 0 : i32
    %c0_i32_0 = arith.constant 0 : i32
    %c0_i32_1 = arith.constant 0 : i32
    return %c0_i32, %c0_i32_0 : i32, i32
  }
  func.func @transform_6(%arg0: i32) -> (i32, i32) {
    %c0_i32 = arith.constant 0 : i32
    %c0_i32_0 = arith.constant 0 : i32
    %c0_i32_1 = arith.constant 0 : i32
    return %c0_i32, %c0_i32_0 : i32, i32
  }
  func.func @transform_7(%arg0: i32) -> (i32, i32) {
    %c0_i32 = arith.constant 0 : i32
    %c0_i32_0 = arith.constant 0 : i32
    %c0_i32_1 = arith.constant 0 : i32
    return %c0_i32, %c0_i32_0 : i32, i32
  }
  func.func @transform_8(%arg0: i32) -> (i32, i32) {
    %c0_i32 = arith.constant 0 : i32
    %c0_i32_0 = arith.constant 0 : i32
    %c0_i32_1 = arith.constant 0 : i32
    return %c0_i32, %c0_i32_0 : i32, i32
  }
  func.func @transform_9(%arg0: i32) -> (i32, i32, i32) {
    %c0_i32 = arith.constant 0 : i32
    %c0_i32_0 = arith.constant 0 : i32
    %c0_i32_1 = arith.constant 0 : i32
    return %arg0, %c0_i32, %c0_i32_0 : i32, i32, i32
  }
}

module attributes {stable_mosaic.version = 11 : i64} {
  func.func @_gf_kernel(%arg0: i32, %arg1: memref<1x8x256xf32, #tpu.memory_space<vmem>>, %arg2: memref<1x8x64xf32, #tpu.memory_space<vmem>>, %arg3: memref<1x8x64xf32, #tpu.memory_space<vmem>>, %arg4: memref<1x1xf32, #tpu.memory_space<vmem>>, %arg5: memref<256x64xf32, #tpu.memory_space<vmem>>, %arg6: memref<64x256xf32, #tpu.memory_space<vmem>>, %arg7: memref<64x64xf32, #tpu.memory_space<vmem>>, %arg8: memref<1x64xf32, #tpu.memory_space<vmem>>, %arg9: memref<1x8x256xf32, #tpu.memory_space<vmem>>) attributes {dimension_semantics = [#tpu.dimension_semantics<parallel>], iteration_bounds = array<i64: 2>, scalar_prefetch = 0 : i64, scratch_operands = 0 : i64, tpu.core_type = #tpu.core_type<tc>, window_params = [{transform_indices = @transform_0, window_bounds = array<i64: 1, 8, 256>}, {transform_indices = @transform_1, window_bounds = array<i64: 1, 8, 64>}, {transform_indices = @transform_2, window_bounds = array<i64: 1, 8, 64>}, {pipeline_mode = #tpu.pipeline_mode<synchronous>, transform_indices = @transform_3, window_bounds = array<i64: 1, 1>}, {pipeline_mode = #tpu.pipeline_mode<synchronous>, transform_indices = @transform_4, window_bounds = array<i64: 256, 64>}, {pipeline_mode = #tpu.pipeline_mode<synchronous>, transform_indices = @transform_5, window_bounds = array<i64: 64, 256>}, {pipeline_mode = #tpu.pipeline_mode<synchronous>, transform_indices = @transform_6, window_bounds = array<i64: 64, 64>}, {pipeline_mode = #tpu.pipeline_mode<synchronous>, transform_indices = @transform_7, window_bounds = array<i64: 1, 64>}, {transform_indices = @transform_8, window_bounds = array<i64: 1, 8, 256>}]} {
    %c0 = arith.constant 0 : index
    %c0_0 = arith.constant 0 : index
    %c0_1 = arith.constant 0 : index
    %0 = vector.load %arg1[%c0, %c0_0, %c0_1] : memref<1x8x256xf32, #tpu.memory_space<vmem>>, vector<1x8x256xf32>
    %1 = vector.shape_cast %0 : vector<1x8x256xf32> to vector<8x256xf32>
    %c0_2 = arith.constant 0 : index
    %c0_3 = arith.constant 0 : index
    %c0_4 = arith.constant 0 : index
    %2 = vector.load %arg2[%c0_2, %c0_3, %c0_4] : memref<1x8x64xf32, #tpu.memory_space<vmem>>, vector<1x8x64xf32>
    %3 = vector.shape_cast %2 : vector<1x8x64xf32> to vector<8x64xf32>
    %c0_5 = arith.constant 0 : index
    %c0_6 = arith.constant 0 : index
    %c0_7 = arith.constant 0 : index
    %4 = vector.load %arg3[%c0_5, %c0_6, %c0_7] : memref<1x8x64xf32, #tpu.memory_space<vmem>>, vector<1x8x64xf32>
    %5 = vector.shape_cast %4 : vector<1x8x64xf32> to vector<8x64xf32>
    %6 = math.absf %5 : vector<8x64xf32>
    %cst = arith.constant 9.99999996E-13 : f32
    %7 = vector.broadcast %cst : f32 to vector<8x64xf32>
    %8 = arith.addf %6, %7 : vector<8x64xf32>
    %c0_8 = arith.constant 0 : index
    %c0_9 = arith.constant 0 : index
    %9 = vector.load %arg4[%c0_8, %c0_9] : memref<1x1xf32, #tpu.memory_space<vmem>>, vector<1x1xf32>
    %10 = vector.extract %9[0, 0] : f32 from vector<1x1xf32>
    %cst_10 = arith.constant 1.000000e+00 : f32
    %11 = arith.divf %cst_10, %10 : f32
    %c0_11 = arith.constant 0 : index
    %c0_12 = arith.constant 0 : index
    %12 = vector.load %arg8[%c0_11, %c0_12] : memref<1x64xf32, #tpu.memory_space<vmem>>, vector<1x64xf32>
    %c0_13 = arith.constant 0 : index
    %c0_14 = arith.constant 0 : index
    %13 = vector.load %arg5[%c0_13, %c0_14] : memref<256x64xf32, #tpu.memory_space<vmem>>, vector<256x64xf32>
    %cst_15 = arith.constant dense<0.000000e+00> : vector<8x64xf32>
    %14 = tpu.matmul %1, %13, %cst_15 {dimension_numbers = #tpu.dot_dimension_numbers<[1], [0], [0], [1], [0, 0, 1, 1], [], []>} : vector<8x256xf32>, vector<256x64xf32>, vector<8x64xf32> -> vector<8x64xf32>
    %15 = arith.mulf %8, %8 : vector<8x64xf32>
    %16 = arith.mulf %15, %14 : vector<8x64xf32>
    %17 = arith.mulf %16, %3 : vector<8x64xf32>
    %18 = vector.broadcast %11 : f32 to vector<8x64xf32>
    %19 = arith.mulf %16, %18 : vector<8x64xf32>
    %20 = arith.mulf %8, %3 : vector<8x64xf32>
    %21 = arith.mulf %16, %14 : vector<8x64xf32>
    %22 = arith.mulf %8, %14 : vector<8x64xf32>
    %23 = tpu.concatenate %8, %17, %19, %20, %21, %22 in 0 : vector<8x64xf32>, vector<8x64xf32>, vector<8x64xf32>, vector<8x64xf32>, vector<8x64xf32>, vector<8x64xf32> -> vector<48x64xf32>
    %c0_16 = arith.constant 0 : index
    %c0_17 = arith.constant 0 : index
    %24 = vector.load %arg7[%c0_16, %c0_17] : memref<64x64xf32, #tpu.memory_space<vmem>>, vector<64x64xf32>
    %cst_18 = arith.constant dense<0.000000e+00> : vector<48x64xf32>
    %25 = tpu.matmul %23, %24, %cst_18 {dimension_numbers = #tpu.dot_dimension_numbers<[1], [0], [0], [1], [0, 0, 1, 1], [], []>} : vector<48x64xf32>, vector<64x64xf32>, vector<48x64xf32> -> vector<48x64xf32>
    %26 = vector.extract_strided_slice %25 {offsets = [0, 0], sizes = [8, 64], strides = [1, 1]} : vector<48x64xf32> to vector<8x64xf32>
    %27 = vector.extract_strided_slice %25 {offsets = [8, 0], sizes = [8, 64], strides = [1, 1]} : vector<48x64xf32> to vector<8x64xf32>
    %28 = vector.extract_strided_slice %25 {offsets = [16, 0], sizes = [8, 64], strides = [1, 1]} : vector<48x64xf32> to vector<8x64xf32>
    %29 = vector.extract_strided_slice %25 {offsets = [24, 0], sizes = [8, 64], strides = [1, 1]} : vector<48x64xf32> to vector<8x64xf32>
    %30 = vector.extract_strided_slice %25 {offsets = [32, 0], sizes = [8, 64], strides = [1, 1]} : vector<48x64xf32> to vector<8x64xf32>
    %31 = vector.extract_strided_slice %25 {offsets = [40, 0], sizes = [8, 64], strides = [1, 1]} : vector<48x64xf32> to vector<8x64xf32>
    %32 = vector.broadcast %12 : vector<1x64xf32> to vector<8x64xf32>
    %33 = arith.mulf %32, %28 : vector<8x64xf32>
    %34 = arith.mulf %33, %31 : vector<8x64xf32>
    %35 = arith.subf %30, %34 : vector<8x64xf32>
    %36 = math.absf %35 : vector<8x64xf32>
    %37 = vector.broadcast %12 : vector<1x64xf32> to vector<8x64xf32>
    %38 = arith.mulf %37, %28 : vector<8x64xf32>
    %39 = arith.mulf %38, %29 : vector<8x64xf32>
    %40 = arith.subf %27, %39 : vector<8x64xf32>
    %cst_19 = arith.constant 0.00999999977 : f32
    %41 = vector.broadcast %cst_19 : f32 to vector<8x64xf32>
    %42 = arith.addf %36, %41 : vector<8x64xf32>
    %43 = arith.divf %40, %42 : vector<8x64xf32>
    %44 = arith.mulf %43, %31 : vector<8x64xf32>
    %45 = arith.subf %29, %44 : vector<8x64xf32>
    %46 = arith.divf %45, %26 : vector<8x64xf32>
    %47 = tpu.concatenate %43, %46 in 0 : vector<8x64xf32>, vector<8x64xf32> -> vector<16x64xf32>
    %c0_20 = arith.constant 0 : index
    %c0_21 = arith.constant 0 : index
    %48 = vector.load %arg7[%c0_20, %c0_21] : memref<64x64xf32, #tpu.memory_space<vmem>>, vector<64x64xf32>
    %cst_22 = arith.constant dense<0.000000e+00> : vector<16x64xf32>
    %49 = tpu.matmul %47, %48, %cst_22 {dimension_numbers = #tpu.dot_dimension_numbers<[1], [0], [0], [1], [0, 0, 1, 1], [], []>} : vector<16x64xf32>, vector<64x64xf32>, vector<16x64xf32> -> vector<16x64xf32>
    %c0_23 = arith.constant 0 : index
    %c0_24 = arith.constant 0 : index
    %50 = vector.load %arg6[%c0_23, %c0_24] : memref<64x256xf32, #tpu.memory_space<vmem>>, vector<64x256xf32>
    %cst_25 = arith.constant dense<0.000000e+00> : vector<16x256xf32>
    %51 = tpu.matmul %49, %50, %cst_25 {dimension_numbers = #tpu.dot_dimension_numbers<[1], [0], [0], [1], [0, 0, 1, 1], [], []>} : vector<16x64xf32>, vector<64x256xf32>, vector<16x256xf32> -> vector<16x256xf32>
    %52 = vector.extract_strided_slice %51 {offsets = [0, 0], sizes = [8, 256], strides = [1, 1]} : vector<16x256xf32> to vector<8x256xf32>
    %53 = arith.mulf %52, %1 : vector<8x256xf32>
    %54 = vector.extract_strided_slice %51 {offsets = [8, 0], sizes = [8, 256], strides = [1, 1]} : vector<16x256xf32> to vector<8x256xf32>
    %55 = arith.addf %53, %54 : vector<8x256xf32>
    %c0_26 = arith.constant 0 : index
    %c0_27 = arith.constant 0 : index
    %c0_28 = arith.constant 0 : index
    %56 = vector.load %arg9[%c0_26, %c0_27, %c0_28] : memref<1x8x256xf32, #tpu.memory_space<vmem>>, vector<1x8x256xf32>
    %57 = vector.shape_cast %56 : vector<1x8x256xf32> to vector<8x256xf32>
    %58 = vector.shape_cast %55 : vector<8x256xf32> to vector<1x8x256xf32>
    tpu.vector_store %arg9[%c0_26, %c0_27, %c0_28], %58 {strides = array<i32>} : memref<1x8x256xf32, #tpu.memory_space<vmem>>, vector<1x8x256xf32>,
    return
  }
  func.func @transform_0(%arg0: i32) -> (i32, i32, i32) {
    %c0_i32 = arith.constant 0 : i32
    %c0_i32_0 = arith.constant 0 : i32
    %c0_i32_1 = arith.constant 0 : i32
    return %arg0, %c0_i32, %c0_i32_0 : i32, i32, i32
  }
  func.func @transform_1(%arg0: i32) -> (i32, i32, i32) {
    %c0_i32 = arith.constant 0 : i32
    %c0_i32_0 = arith.constant 0 : i32
    %c0_i32_1 = arith.constant 0 : i32
    return %arg0, %c0_i32, %c0_i32_0 : i32, i32, i32
  }
  func.func @transform_2(%arg0: i32) -> (i32, i32, i32) {
    %c0_i32 = arith.constant 0 : i32
    %c0_i32_0 = arith.constant 0 : i32
    %c0_i32_1 = arith.constant 0 : i32
    return %arg0, %c0_i32, %c0_i32_0 : i32, i32, i32
  }
  func.func @transform_3(%arg0: i32) -> (i32, i32) {
    %c0_i32 = arith.constant 0 : i32
    %c0_i32_0 = arith.constant 0 : i32
    %c0_i32_1 = arith.constant 0 : i32
    return %c0_i32, %c0_i32_0 : i32, i32
  }
  func.func @transform_4(%arg0: i32) -> (i32, i32) {
    %c0_i32 = arith.constant 0 : i32
    %c0_i32_0 = arith.constant 0 : i32
    %c0_i32_1 = arith.constant 0 : i32
    return %c0_i32, %c0_i32_0 : i32, i32
  }
  func.func @transform_5(%arg0: i32) -> (i32, i32) {
    %c0_i32 = arith.constant 0 : i32
    %c0_i32_0 = arith.constant 0 : i32
    %c0_i32_1 = arith.constant 0 : i32
    return %c0_i32, %c0_i32_0 : i32, i32
  }
  func.func @transform_6(%arg0: i32) -> (i32, i32) {
    %c0_i32 = arith.constant 0 : i32
    %c0_i32_0 = arith.constant 0 : i32
    %c0_i32_1 = arith.constant 0 : i32
    return %c0_i32, %c0_i32_0 : i32, i32
  }
  func.func @transform_7(%arg0: i32) -> (i32, i32) {
    %c0_i32 = arith.constant 0 : i32
    %c0_i32_0 = arith.constant 0 : i32
    %c0_i32_1 = arith.constant 0 : i32
    return %c0_i32, %c0_i32_0 : i32, i32
  }
  func.func @transform_8(%arg0: i32) -> (i32, i32, i32) {
    %c0_i32 = arith.constant 0 : i32
    %c0_i32_0 = arith.constant 0 : i32
    %c0_i32_1 = arith.constant 0 : i32
    return %arg0, %c0_i32, %c0_i32_0 : i32, i32, i32
  }
}

</mosaic_0001>

<bundles_post_ra>
// kernel: agf_forward.3
= control target key start
LH: loop header
LB: loop body
LE: loop exit
PB: predicated region body
PF: predicated region fallthrough
CT: control target
= control target key end

     0   :  { %s843_s29 = smov 0   ;;  %s1091_s0 = inlined_call_operand.vmem [shape: f32[2,8,256], index: 0, kind: input, shape index: {}]   ;;  %s1092_s1 = inlined_call_operand.vmem [shape: f32[2,8,64], index: 1, kind: input, shape index: {}]   ;;  %s1093_s2 = inlined_call_operand.vmem [shape: f32[2,8,64], index: 2, kind: input, shape index: {}]   ;;  %s1094_s3 = inlined_call_operand.<no memory space> [shape: f32[1,1], index: 3, kind: input, shape index: {}]   ;;  %s1095_s4 = inlined_call_operand.vmem [shape: f32[256,64], index: 4, kind: input, shape index: {}]   ;;  %s1096_s5 = inlined_call_operand.vmem [shape: f32[64,256], index: 5, kind: input, shape index: {}]   ;;  %s1097_s6 = inlined_call_operand.vmem [shape: f32[64,64], index: 6, kind: input, shape index: {}]   ;;  %s1098_s7 = inlined_call_operand.vmem [shape: f32[1,64], index: 7, kind: input, shape index: {}]   ;;  %s1099_s8 = inlined_call_operand.vmem [shape: f32[2,8,256], index: 8, kind: output, shape index: {}]  }
   0x1   :  { %v13_v0 = vstv %s1094_s3 }
   0x2   :  { %14 = vst [vmem:[#allocation2] sm:$0x1] %v13_v0 }
   0x3 LB: > { %s733_s30 = sadd.s32 4294967295, %s793_s29   ;;  %p737_p0 = scmp.ge.s32.totalorder %s793_s29, 1  ;;  %s793_s29 = sphi %s843_s29, %s20_s29  }
   0x4   : > { %p282_p1 = scmp.lt.s32.totalorder %s793_s29, 3 }
   0x6   : > { %p283_p2 = pnand %p737_p0, %p282_p1 }
   0x7   : > { %p324_p3 = scmp.lt.s32.totalorder (!%p283_p2), %s733_s30, 1 }
   0x8   : > { %286 = sbr.rel (%p283_p2) target bundleno = 644 (0x284), region = 52 }
   0xd   : > { %v382_v1 = vld [vmem:[%s1095_s4 + $0x78] sm:$0xff]  ;;  %v381_v3 = vld [vmem:[%s1095_s4 + $0x70] sm:$0xff]  ;;  %v380_v5 = vld [vmem:[%s1095_s4 + $0x68] sm:$0xff]  ;;  %s1101_s30 = smov (!%p324_p3, %s733_s30), 1  ;;  %vm455_vm0 = vcmask 523264  }
   0xe   : > { %v398_v2 = vld [vmem:[%s1095_s4 + $0xf8] sm:$0xff]  ;;  %399 = vmatpush.msra.mxu0 %v382_v1  ;;  %v397_v4 = vld [vmem:[%s1095_s4 + $0xf0] sm:$0xff]  ;;  %v396_v6 = vld [vmem:[%s1095_s4 + $0xe8] sm:$0xff]  ;;  %s758_s18 = sshll.u32 %s1101_s30, 4  ;;  %s740_s13 = sshll.u32 %s1101_s30, 3 }
   0xf   : > { %419 = vmatpush.msra.mxu1 %v398_v2  ;;  %v379_v7 = vld [vmem:[%s1095_s4 + $0x60] sm:$0xff]  ;;  %v378_v9 = vld [vmem:[%s1095_s4 + $0x58] sm:$0xff]  ;;  %v377_v11 = vld [vmem:[%s1095_s4 + $0x50] sm:$0xff]  ;;  %s328_s9 = scalar_lea.vmem %s1091_s0, %s758_s18  ;;  %s336_s21 = scalar_lea.vmem %s1093_s2, %s740_s13 }
  0x10   : > { %400 = vmatpush.msra.mxu0 %v381_v3  ;;  %v395_v8 = vld [vmem:[%s1095_s4 + $0xe0] sm:$0xff]  ;;  %v394_v10 = vld [vmem:[%s1095_s4 + $0xd8] sm:$0xff]  ;;  %v393_v12 = vld [vmem:[%s1095_s4 + $0xd0] sm:$0xff]  ;;  %s332_s17 = scalar_lea.vmem %s1092_s1, %s740_s13  ;;  %s341_s15 = scalar_lea.vmem %s1099_s8, %s758_s18 }
  0x11   : > { %420 = vmatpush.msra.mxu1 %v397_v4  ;;  %v376_v13 = vld [vmem:[%s1095_s4 + $0x48] sm:$0xff]  ;;  %v348_v15 = vld [vmem:[#allocation2] sm:$0x1]  ;;  %v374_v18 = vld [vmem:[%s1095_s4 + $0x38] sm:$0xff] }
  0x12   : > { %401 = vmatpush.msra.mxu0 %v380_v5  ;;  %v392_v14 = vld [vmem:[%s1095_s4 + $0xc8] sm:$0xff]  ;;  %v375_v16 = vld [vmem:[%s1095_s4 + $0x40] sm:$0xff]  ;;  %768 = vpush %v348_v15  ;;  %v390_v19 = vld [vmem:[%s1095_s4 + $0xb8] sm:$0xff] }
  0x13   : > { %421 = vmatpush.msra.mxu1 %v396_v6  ;;  %v391_v17 = vld [vmem:[%s1095_s4 + $0xc0] sm:$0xff]  ;;  %v373_v20 = vld [vmem:[%s1095_s4 + $0x30] sm:$0xff]  ;;  %v372_v22 = vld [vmem:[%s1095_s4 + $0x28] sm:$0xff] }
  0x14   : > { %402 = vmatpush.msra.mxu0 %v379_v7  ;;  %v389_v21 = vld [vmem:[%s1095_s4 + $0xb0] sm:$0xff]  ;;  %v388_v23 = vld [vmem:[%s1095_s4 + $0xa8] sm:$0xff]  ;;  %v371_v24 = vld [vmem:[%s1095_s4 + $0x20] sm:$0xff] }
  0x15   : > { %422 = vmatpush.msra.mxu1 %v395_v8  ;;  %v387_v25 = vld [vmem:[%s1095_s4 + $0xa0] sm:$0xff]  ;;  %v370_v26 = vld [vmem:[%s1095_s4 + $0x18] sm:$0xff]  ;;  %v369_v28 = vld [vmem:[%s1095_s4 + $0x10] sm:$0xff] }
  0x16   : > { %403 = vmatpush.msra.mxu0 %v378_v9  ;;  %v386_v27 = vld [vmem:[%s1095_s4 + $0x98] sm:$0xff]  ;;  %v385_v29 = vld [vmem:[%s1095_s4 + $0x90] sm:$0xff]  ;;  %v368_v30 = vld [vmem:[%s1095_s4 + $0x8] sm:$0xff] }
  0x17   : > { %423 = vmatpush.msra.mxu1 %v394_v10  ;;  %v384_v31 = vld [vmem:[%s1095_s4 + $0x88] sm:$0xff]  ;;  %v367_v32 = vld [vmem:[%s1095_s4] sm:$0xff]  ;;  %v454_v36 = vld [vmem:[%s1097_s6 + $0x38] sm:$0xff] }
  0x18   : > { %404 = vmatpush.msra.mxu0 %v377_v11  ;;  %v383_v33 = vld [vmem:[%s1095_s4 + $0x80] sm:$0xff]  ;;  %v961_v35 = vld [vmem:[%s328_s9 + $0x8] sm:$0xff]  ;;  %v453_v37 = vld [vmem:[%s1097_s6 + $0x30] sm:$0xff]  ;;  %482 = vmatpush.msra.mxu2 %v454_v36 }
  0x19   : > { %424 = vmatpush.msra.mxu1 %v393_v12  ;;  %v959_v34 = vld [vmem:[%s328_s9] sm:$0xff]  ;;  %565 = vmatpush.msra.mxu3 %v454_v36  ;;  %v452_v38 = vld [vmem:[%s1097_s6 + $0x28] sm:$0xff]  ;;  %v450_v41 = vld [vmem:[%s1097_s6 + $0x18] sm:$0xff] }
  0x1a   : > { %405 = vmatpush.msra.mxu0 %v376_v13  ;;  %483 = vmatpush.msra.mxu2 %v453_v37  ;;  %v451_v39 = vld [vmem:[%s1097_s6 + $0x20] sm:$0xff]  ;;  %v449_v42 = vld [vmem:[%s1097_s6 + $0x10] sm:$0xff]  ;;  %v448_v44 = vld [vmem:[%s1097_s6 + $0x8] sm:$0xff] }
  0x1b   : > { %425 = vmatpush.msra.mxu1 %v392_v14  ;;  %566 = vmatpush.msra.mxu3 %v453_v37  ;;  %v345_v40 = vld [vmem:[%s336_s21] sm:$0xff] }
  0x1c   : > { %406 = vmatpush.msra.mxu0 %v375_v16  ;;  %484 = vmatpush.msra.mxu2 %v452_v38  ;;  %v346_v43 = vand.u32 2147483647, %v345_v40  ;;  %v447_v45 = vld [vmem:[%s1097_s6] sm:$0xff]  ;;  %v594_v16 = vld [vmem:[%s1096_s5 + $0x70] sm:$0xff] }
  0x1d   : > { %426 = vmatpush.msra.mxu1 %v391_v17  ;;  %567 = vmatpush.msra.mxu3 %v452_v38  ;;  %v344_v62 = vld [vmem:[%s332_s17] sm:$0xff]  ;;  %v595_v17 = vld [vmem:[%s1096_s5 + $0x78] sm:$0xff] }
  0x1e   : > { %407 = vmatpush.msra.mxu0 %v374_v18  ;;  %485 = vmatpush.msra.mxu2 %v451_v39  ;;  %v347_v46 = vadd.f32 1e-12, %v346_v43  ;;  %v780_v11 = vld [vmem:[%s1098_s7] ss:$0 sm:$0xff] }
  0x1f   : > { %427 = vmatpush.msra.mxu1 %v390_v19  ;;  %568 = vmatpush.msra.mxu3 %v451_v39  ;;  %v592_v18 = vld [vmem:[%s1096_s5 + $0x60] sm:$0xff] }
  0x20   : > { %408 = vmatpush.msra.mxu0 %v373_v20  ;;  %486 = vmatpush.msra.mxu2 %v450_v41  ;;  %v439_v58 = vmul.f32 %v347_v46, %v347_v46  ;;  %v444_v3 = vmul.f32 %v347_v46, %v344_v62  ;;  %v593_v20 = vld [vmem:[%s1096_s5 + $0x68] sm:$0xff]  ;;  %v580_v38 = vld [vmem:[%s1096_s5] sm:$0xff] }
  0x21   : > { %428 = vmatpush.msra.mxu1 %v389_v21  ;;  %569 = vmatpush.msra.mxu3 %v450_v41  ;;  %v590_v21 = vld [vmem:[%s1096_s5 + $0x50] sm:$0xff] }
  0x22   : > { %409 = vmatpush.msra.mxu0 %v372_v22  ;;  %487 = vmatpush.msra.mxu2 %v449_v42  ;;  %v591_v22 = vld [vmem:[%s1096_s5 + $0x58] sm:$0xff] }
  0x23   : > { %429 = vmatpush.msra.mxu1 %v388_v23  ;;  %570 = vmatpush.msra.mxu3 %v449_v42 }
  0x24   : > { %410 = vmatpush.msra.mxu0 %v371_v24  ;;  %488 = vmatpush.msra.mxu2 %v448_v44  ;;  %v588_v24 = vld [vmem:[%s1096_s5 + $0x40] sm:$0xff] }
  0x25   : > { %430 = vmatpush.msra.mxu1 %v387_v25  ;;  %571 = vmatpush.msra.mxu3 %v448_v44  ;;  %v589_v25 = vld [vmem:[%s1096_s5 + $0x48] sm:$0xff] }
  0x26   : > { %411 = vmatpush.msra.mxu0 %v370_v26  ;;  %489 = vmatpush.msra.mxu2 %v447_v45  ;;  %v586_v26 = vld [vmem:[%s1096_s5 + $0x30] sm:$0xff] }
  0x27   : > { %431 = vmatpush.msra.mxu1 %v386_v27  ;;  %572 = vmatpush.msra.mxu3 %v447_v45  ;;  %v587_v27 = vld [vmem:[%s1096_s5 + $0x38] sm:$0xff] }
  0x28   : > { %412 = vmatpush.msra.mxu0 %v369_v28  ;;  %744 = vmatmul.msk.f32.vlgmr.msra.gmra.mxu2 %vm455_vm0, %v347_v46 }
  0x29   : > { %432 = vmatpush.msra.mxu1 %v385_v29  ;;  %610 = vmatpush.msrb.mxu3 %v594_v16  ;;  %v584_v29 = vld [vmem:[%s1096_s5 + $0x20] sm:$0xff] }
  0x2a   : > { %413 = vmatpush.msra.mxu0 %v368_v30  ;;  %v585_v30 = vld [vmem:[%s1096_s5 + $0x28] sm:$0xff] }
  0x2b   : > { %433 = vmatpush.msra.mxu1 %v384_v31  ;;  %611 = vmatpush.msrb.mxu3 %v592_v18 }
  0x2c   : > { %414 = vmatpush.msra.mxu0 %v367_v32  ;;  %v582_v32 = vld [vmem:[%s1096_s5 + $0x10] sm:$0xff] }
  0x2d   : > { %434 = vmatpush.msra.mxu1 %v383_v33  ;;  %415 = vmatmul.f32.vlgmr.msra.gmra.mxu0 %v959_v34  ;;  %v583_v33 = vld [vmem:[%s1096_s5 + $0x18] sm:$0xff] }
  0x2e   : > { %435 = vmatmul.f32.vlgmr.msra.gmra.mxu1 %v961_v35  ;;  %633 = vmatpush.msrb.mxu0 %v595_v17 }
  0x2f   : > { %760 = vmatpush.msrb.mxu1 %v595_v17  ;;  %612 = vmatpush.msrb.mxu3 %v590_v21 }
  0x30   : > { %634 = vmatpush.msrb.mxu0 %v593_v20 }
  0x31   : > { %761 = vmatpush.msrb.mxu1 %v593_v20  ;;  %613 = vmatpush.msrb.mxu3 %v588_v24 }
  0x32   : > { %635 = vmatpush.msrb.mxu0 %v591_v22 }
  0x33   : > { %762 = vmatpush.msrb.mxu1 %v591_v22  ;;  %614 = vmatpush.msrb.mxu3 %v586_v26 }
  0x34   : > { %636 = vmatpush.msrb.mxu0 %v589_v25 }
  0x35   : > { %763 = vmatpush.msrb.mxu1 %v589_v25  ;;  %615 = vmatpush.msrb.mxu3 %v584_v29 }
  0x36   : > { %637 = vmatpush.msrb.mxu0 %v587_v27 }
  0x37   : > { %764 = vmatpush.msrb.mxu1 %v587_v27  ;;  %616 = vmatpush.msrb.mxu3 %v582_v32 }
  0x38   : > { %638 = vmatpush.msrb.mxu0 %v585_v30 }
  0x39   : > { %765 = vmatpush.msrb.mxu1 %v585_v30  ;;  %617 = vmatpush.msrb.mxu3 %v580_v38 }
  0x3a   : > { %639 = vmatpush.msrb.mxu0 %v583_v33 }
  0x3b   : > { %766 = vmatpush.msrb.mxu1 %v583_v33 }
  0x43   : > { %s769_s14 = spop %768 }
  0x44   : > { %v350_v47 = vstv %s769_s14 }
  0x45   : > { %781 = vrcp.f32 %v350_v47  ;;  %v362_v50 = vand.u32 2147483648, %v350_v47  ;;  %vm356_vm1 = vweird.f32 %v350_v47  ;;  %v360_v52 = vand.u32 2147483647, %v350_v47 }
  0x47   : > { %v363_v54 = vor.u32 1.1754944e-38, %v362_v50  ;;  %vm361_vm4 = vcmp.eq.f32.partialorder %v360_v52, 8.507059e+37 }
  0x4b   : > { %v782_v48 = vpop.eup %781 }
  0x4c   : > { %v352_v49 = vmul.f32 %v782_v48, %v350_v47  ;;  %vm357_vm2 = vweird.f32 %v782_v48 }
  0x4d   : > { %vm358_vm3 = vmor %vm356_vm1, %vm357_vm2 }
  0x4e   : > { %v353_v51 = vsub.f32 1.0, %v352_v49 }
  0x50   : > { %v354_v53 = vmul.f32 %v782_v48, %v353_v51 }
  0x52   : > { %v355_v55 = vadd.f32 %v782_v48, %v354_v53 }
  0x54   : > { %v359_v56 = vsel %vm358_vm3, %v782_v48, %v355_v55 }
  0x55   : > { %v364_v57 = vsel %vm361_vm4, %v363_v54, %v359_v56 }
  0x56   : > { %770 = vpush %v364_v57 }
  0x87   : > { %s771_s19 = spop %770 }
  0x88   : > { %v442_v1 = vstv %s771_s19 }
  0xaa   : > { %v416_v59 = vpop.f32.mrf.mxu0 }
  0xab   : > { %v436_v60 = vpop.f32.mrf.mxu1  ;;  %v1006_v6 = vpop.f32.mrf.mxu2 }
  0xac   : > { %v437_v61 = vadd.f32 %v436_v60, %v416_v59  ;;  %783 = vrcp.f32 %v1006_v6  ;;  %vm541_vm7 = vweird.f32 %v1006_v6  ;;  %v547_v50 = vand.u32 2147483648, %v1006_v6 }
  0xad   : > { %v545_v54 = vand.u32 2147483647, %v1006_v6 }
  0xae   : > { %v440_v63 = vmul.f32 %v439_v58, %v437_v61  ;;  %v446_v5 = vmul.f32 %v437_v61, %v347_v46  ;;  %v548_v56 = vor.u32 1.1754944e-38, %v547_v50 }
  0xaf   : > { %vm546_vm12 = vcmp.eq.f32.partialorder %v545_v54, 8.507059e+37 }
  0xb0   : > { %v441_v0 = vmul.f32 %v440_v63, %v344_v62  ;;  %v443_v2 = vmul.f32 %v442_v1, %v440_v63  ;;  %v445_v4 = vmul.f32 %v440_v63, %v437_v61  ;;  %v581_v61 = vld [vmem:[%s1096_s5 + $0x8] sm:$0xff] }
  0xb1   : > { %640 = vmatpush.msrb.mxu0 %v581_v61  ;;  %767 = vmatpush.msrb.mxu1 %v581_v61 }
  0xb2   : > { %745 = vmatmul.msk.f32.gmra.mxu2 %vm455_vm0, %v441_v0  ;;  %v784_v28 = vpop.eup %783 }
  0xb3   : > { %v537_v31 = vmul.f32 %v784_v28, %v1006_v6  ;;  %vm542_vm10 = vweird.f32 %v784_v28 }
  0xb4   : > { %vm543_vm11 = vmor %vm541_vm7, %vm542_vm10 }
  0xb5   : > { %v538_v39 = vsub.f32 1.0, %v537_v31 }
  0xb7   : > { %v539_v45 = vmul.f32 %v784_v28, %v538_v39 }
  0xb9   : > { %v540_v53 = vadd.f32 %v784_v28, %v539_v45 }
  0xba   : > { %746 = vmatmul.msk.f32.gmra.mxu2 %vm455_vm0, %v443_v2 }
  0xbb   : > { %v544_v58 = vsel %vm543_vm11, %v784_v28, %v540_v53 }
  0xbc   : > { %v549_v59 = vsel %vm546_vm12, %v548_v56, %v544_v58 }
  0xc2   : > { %747 = vmatmul.msk.f32.gmra.mxu2 %vm455_vm0, %v444_v3 }
  0xca   : > { %748 = vmatmul.msk.f32.gmra.mxu2 %vm455_vm0, %v445_v4 }
  0xd2   : > { %749 = vmatmul.msk.f32.gmra.mxu2 %vm455_vm0, %v446_v5 }
 0x135   : > { %v1008_v7 = vpop.f32.mrf.mxu2 }
 0x13d   : > { %v497_v8 = vpop.f32.mrf.mxu2 }
 0x13e   : > { %v512_v12 = vmul.f32 %v780_v11, %v497_v8 }
 0x145   : > { %v1010_v9 = vpop.f32.mrf.mxu2 }
 0x146   : > { %v516_v42 = vmul.f32 %v512_v12, %v1010_v9 }
 0x148   : > { %v517_v48 = vsub.f32 %v1008_v7, %v516_v42 }
 0x14d   : > { %v503_v10 = vpop.f32.mrf.mxu2 }
 0x155   : > { %v1015_v13 = vpop.f32.mrf.mxu2 }
 0x156   : > { %v513_v14 = vmul.f32 %v512_v12, %v1015_v13 }
 0x158   : > { %v514_v15 = vsub.f32 %v503_v10, %v513_v14 }
 0x15a   : > { %v515_v19 = vand.u32 2147483647, %v514_v15 }
 0x15c   : > { %v518_v23 = vadd.f32 0.01, %v515_v19 }
 0x15e   : > { %785 = vrcp.f32 %v518_v23  ;;  %v530_v41 = vand.u32 2147483648, %v518_v23  ;;  %v528_v44 = vand.u32 2147483647, %v518_v23  ;;  %vm524_vm6 = vweird.f32 %v518_v23 }
 0x160   : > { %v531_v47 = vor.u32 1.1754944e-38, %v530_v41  ;;  %vm529_vm9 = vcmp.eq.f32.partialorder %v528_v44, 8.507059e+37 }
 0x164   : > { %v786_v36 = vpop.eup %785 }
 0x165   : > { %v520_v37 = vmul.f32 %v786_v36, %v518_v23  ;;  %vm525_vm5 = vweird.f32 %v786_v36 }
 0x166   : > { %vm526_vm8 = vmor %vm524_vm6, %vm525_vm5 }
 0x167   : > { %v521_v40 = vsub.f32 1.0, %v520_v37 }
 0x169   : > { %v522_v43 = vmul.f32 %v786_v36, %v521_v40 }
 0x16b   : > { %v523_v46 = vadd.f32 %v786_v36, %v522_v43 }
 0x16d   : > { %v527_v49 = vsel %vm526_vm8, %v786_v36, %v523_v46 }
 0x16e   : > { %v532_v51 = vsel %vm529_vm9, %v531_v47, %v527_v49 }
 0x16f   : > { %v533_v52 = vmul.f32 %v532_v51, %v517_v48 }
 0x171   : > { %v534_v55 = vmul.f32 %v533_v52, %v1015_v13  ;;  %750 = vmatmul.msk.f32.vlgmr.msra.gmra.mxu3 %vm455_vm0, %v533_v52 }
 0x173   : > { %v535_v57 = vsub.f32 %v1010_v9, %v534_v55 }
 0x175   : > { %v550_v60 = vmul.f32 %v549_v59, %v535_v57 }
 0x179   : > { %751 = vmatmul.msk.f32.gmra.mxu3 %vm455_vm0, %v550_v60 }
 0x1f4   : > { %v574_v62 = vpop.f32.mrf.mxu3 }
 0x1f5   : > { %752 = vmatmul.msk.f32.vlgmr.msrb.gmra.mxu3 %vm455_vm0, %v574_v62  ;;  %754 = vmatmul.msk.f32.vlgmr.msrb.gmra.mxu0 %vm455_vm0, %v574_v62 }
 0x1fc   : > { %v577_v63 = vpop.f32.mrf.mxu3 }
 0x1fd   : > { %753 = vmatmul.msk.f32.gmra.mxu3 %vm455_vm0, %v577_v63  ;;  %755 = vmatmul.msk.f32.vlgmr.msrb.gmra.mxu1 %vm455_vm0, %v577_v63 }
 0x272   : > { %v642_v0 = vpop.f32.mrf.mxu0 }
 0x273   : > { %v649_v2 = vmul.f32 %v642_v0, %v961_v35 }
 0x278   : > { %v619_v1 = vpop.f32.mrf.mxu3 }
 0x279   : > { %v648_v5 = vmul.f32 %v619_v1, %v959_v34 }
 0x27a   : > { %v645_v3 = vpop.f32.mrf.mxu1 }
 0x27b   : > { %v651_v4 = vadd.f32 %v649_v2, %v645_v3 }
 0x27d   : > { %653 = vst [vmem:[%s341_s15 + $0x8] sm:$0xff] %v651_v4 }
 0x280   : > { %v622_v6 = vpop.f32.mrf.mxu3 }
 0x281   : > { %v650_v7 = vadd.f32 %v648_v5, %v622_v6 }
 0x283   : > { %652 = vst [vmem:[%s341_s15] sm:$0xff] %v650_v7 }
 0x284 PF: > { %s20_s29 = sadd.s32 1, %s793_s29  }
 0x285   : > { %p17_p4 = scmp.ge.s32.totalorder %s20_s29, 4  }
 0x287   :  { %19 = sbr.rel (!%p17_p4) target bundleno = 3 (0x3), region = 88 }

// kernel: agf_forward.2
= control target key start
LH: loop header
LB: loop body
LE: loop exit
PB: predicated region body
PF: predicated region fallthrough
CT: control target
= control target key end

     0   :  { %s1899_s0 = inlined_call_operand.vmem [shape: f32[2,8,64], index: 0, kind: input, shape index: {}]   ;;  %s1900_s1 = inlined_call_operand.hbm [shape: f32[9,64,64], index: 1, kind: input, shape index: {}]   ;;  %s1901_s2 = inlined_call_operand.vmem [shape: f32[8,72], index: 2, kind: input, shape index: {}]   ;;  %s1902_s3 = inlined_call_operand.vmem [shape: f32[2,8,1], index: 3, kind: input, shape index: {}]   ;;  %s1903_s4 = inlined_call_operand.vmem [shape: f32[8,8], index: 4, kind: input, shape index: {}]   ;;  %s1904_s5 = inlined_call_operand.vmem [shape: f32[2,72], index: 5, kind: input, shape index: {}]   ;;  %s1905_s6 = inlined_call_operand.vmem [shape: f32[2,1], index: 6, kind: input, shape index: {}]   ;;  %s1906_s7 = inlined_call_operand.vmem [shape: f32[1,18], index: 7, kind: input, shape index: {}]   ;;  %s1907_s8 = inlined_call_operand.<no memory space> [shape: f32[1,1], index: 8, kind: input, shape index: {}]   ;;  %s1908_s9 = inlined_call_operand.vmem [shape: f32[2,8,64], index: 9, kind: output, shape index: {}]  }
   0x1   :  { %v14_v0 = vstv %s1907_s8 }
   0x2   :  { %15 = vst [vmem:[#allocation2] sm:$0x1] %v14_v0 }
   0x3   :  { %16 = vsyncpa [#allocation4], 0  ;;  %s1431_s11 = smov 0  }
   0x4 LB: > { %s258_s14 = sshll.u32 %s1900_s1, 4  ;;  %s1440_s15 = sadd.s32 4294967295, %s1372_s11   ;;  %s1372_s11 = sphi %s1431_s11, %s22_s11   ;;  %s259_s14 = int_to_ptr.hbm [resolvable:$true] %s258_s14 }
   0x5   : > { %p1255_p0 = scmp.ge.s32.totalorder %s1372_s11, 1  ;;  %p247_p1 = scmp.lt.s32.totalorder %s1372_s11, 3 }
   0x6   : > { %p1307_p2 = scmp.eq.s32.totalorder %s1440_s15, 0  ;;  %s1374_s8 = smov [#allocation3]  }
   0x7   : > { %p248_p3 = pnand %p1255_p0, %p247_p1  ;;  %s260_s16 = sshll.u32 %s1374_s8, 4  ;;  %s261_s16 = int_to_ptr.vmem [resolvable:$true] %s260_s16 }
   0x8   : > { %s1375_s17 = smov 128   ;;  %s1376_s18 = smov 8  }
   0x9   : > { %p1303_p4 = pneg %p248_p3  ;;  %304 = sbr.rel (%p248_p3) target bundleno = 1350 (0x546), region = 56 }
   0xb   : > { %p1304_p5 = pnand %p1307_p2, %p1303_p4 }
   0xd   : > { %1306 = dma.hbm_to_vmem [thread:$0]  (!%p1304_p5), %s259_s14, 9216, %s261_s16, [#allocation4], %s1375_s17, %s1375_s17, %s1376_s18  }
   0xe   : > { %1367 = dma.done.wait (%p1307_p2), [#allocation4], 9216  }
   0xf   : > { %1369 = vsyncadd (%p1307_p2), [#allocation4], 4294958080  ;;  %v1445_v1 = vld [vmem:[#allocation3 + $0x38] sm:$0xff]  ;;  %v1447_v2 = vld [vmem:[#allocation3 + $0x30] sm:$0xff]  ;;  %p339_p6 = scmp.lt.s32.totalorder %s1440_s15, 1  ;;  %vm356_vm0 = vcmask 523264  }
  0x10   : > { %368 = vmatpush.msra.mxu0 %v1445_v1  ;;  %v1451_v3 = vld [vmem:[#allocation3 + $0x28] sm:$0xff]  ;;  %v1453_v4 = vld [vmem:[#allocation3 + $0xf8] sm:$0xff]  ;;  %v1459_v6 = vld [vmem:[#allocation3 + $0xf0] sm:$0xff]  ;;  %vm613_vm1 = vcmask 588800   ;;  %vm658_vm2 = vcmask 64512   ;;  %vm1122_vm7 = vcmask 1041408  }
  0x11   : > { %1942 = vst [vmem:[#allocation6_spill] sm:$0xff] %v1453_v4  ;;  %v1455_v5 = vld [vmem:[#allocation3 + $0xb8] sm:$0xff]  ;;  %455 = vmatpush.msra.mxu3 %v1453_v4  ;;  %v1461_v7 = vld [vmem:[#allocation3 + $0xb0] sm:$0xff]  ;;  %v1463_v8 = vld [vmem:[#allocation3 + $0x20] sm:$0xff]  ;;  %s1991_s15 = smov (!%p339_p6, %s1440_s15), 1  ;;  %vm1124_vm8 = vcmask 1043456  }
  0x12   : > { %369 = vmatpush.msra.mxu0 %v1447_v2  ;;  %1943 = vst [vmem:[#allocation7_spill] sm:$0xff] %v1459_v6  ;;  %426 = vmatpush.msra.mxu2 %v1455_v5  ;;  %v1466_v9 = vld [vmem:[#allocation3 + $0xe8] sm:$0xff]  ;;  %v1475_v11 = vld [vmem:[#allocation3 + $0x18] sm:$0xff]  ;;  %v1478_v12 = vld [vmem:[#allocation3 + $0xe0] sm:$0xff]  ;;  %s1260_s19 = sshll.u32 %s1991_s15, 3  ;;  %vm1126_vm9 = vcmask 1045504  }
  0x13   : > { %1944 = vst [vmem:[#allocation8_spill] sm:$0xff] %v1466_v9  ;;  %456 = vmatpush.msra.mxu3 %v1459_v6  ;;  %v1473_v10 = vld [vmem:[#allocation3 + $0xa8] sm:$0xff]  ;;  %v1480_v13 = vld [vmem:[#allocation3 + $0x78] sm:$0xff]  ;;  %v1484_v14 = vld [vmem:[#allocation3 + $0xa0] sm:$0xff]  ;;  %s342_s22 = scalar_lea.vmem %s1899_s0, %s1260_s19  ;;  %vm1139_vm10 = vcmask 146432   ;;  %s346_s20 = scalar_lea.vmem %s1908_s9, %s1260_s19 }
  0x14   : > { %370 = vmatpush.msra.mxu0 %v1451_v3  ;;  %427 = vmatpush.msra.mxu2 %v1461_v7  ;;  %1945 = vst [vmem:[#allocation9_spill] sm:$0xff] %v1478_v12  ;;  %v1486_v15 = vld [vmem:[#allocation3 + $0x10] sm:$0xff]  ;;  %v1489_v16 = vld [vmem:[#allocation3 + $0xd8] sm:$0xff]  ;;  %v1499_v19 = vld [vmem:[#allocation3 + $0x68] sm:$0xff] }
  0x15   : > { %457 = vmatpush.msra.mxu3 %v1466_v9  ;;  %1946 = vst [vmem:[#allocation10_spill] sm:$0xff] %v1489_v16  ;;  %397 = vmatpush.msra.mxu1 %v1480_v13  ;;  %v1492_v17 = vld [vmem:[#allocation3 + $0x70] sm:$0xff]  ;;  %v1497_v18 = vld [vmem:[#allocation3 + $0x98] sm:$0xff]  ;;  %v1501_v20 = vld [vmem:[#allocation3 + $0x8] sm:$0xff] }
  0x16   : > { %371 = vmatpush.msra.mxu0 %v1463_v8  ;;  %428 = vmatpush.msra.mxu2 %v1473_v10  ;;  %v1504_v21 = vld [vmem:[#allocation3 + $0xd0] sm:$0xff]  ;;  %v1511_v23 = vld [vmem:[#allocation3 + $0x60] sm:$0xff]  ;;  %v1521_v25 = vld [vmem:[#allocation3 + $0xc8] sm:$0xff] }
  0x17   : > { %458 = vmatpush.msra.mxu3 %v1478_v12  ;;  %1947 = vst [vmem:[#allocation11_spill] sm:$0xff] %v1504_v21  ;;  %398 = vmatpush.msra.mxu1 %v1492_v17  ;;  %v1509_v22 = vld [vmem:[#allocation3 + $0x90] sm:$0xff]  ;;  %v1518_v24 = vld [vmem:[#allocation3] sm:$0xff]  ;;  %v1525_v26 = vld [vmem:[#allocation3 + $0x138] sm:$0xff] }
  0x18   : > { %372 = vmatpush.msra.mxu0 %v1475_v11  ;;  %429 = vmatpush.msra.mxu2 %v1484_v14  ;;  %1948 = vst [vmem:[#allocation12_spill] sm:$0xff] %v1521_v25  ;;  %v1528_v27 = vld [vmem:[#allocation3 + $0x88] sm:$0xff]  ;;  %v1531_v28 = vld [vmem:[#allocation3 + $0xc0] sm:$0xff]  ;;  %v1537_v30 = vld [vmem:[#allocation3 + $0x130] sm:$0xff] }
  0x19   : > { %459 = vmatpush.msra.mxu3 %v1489_v16  ;;  %399 = vmatpush.msra.mxu1 %v1499_v19  ;;  %1949 = vst [vmem:[#allocation13_spill] sm:$0xff] %v1531_v28  ;;  %v1534_v29 = vld [vmem:[%s342_s22] sm:$0xff]  ;;  %v1548_v34 = vld [vmem:[#allocation3 + $0x128] sm:$0xff]  ;;  %v1557_v36 = vld [vmem:[#allocation3 + $0x1f0] sm:$0xff] }
  0x1a   : > { %373 = vmatpush.msra.mxu0 %v1486_v15  ;;  %430 = vmatpush.msra.mxu2 %v1497_v18  ;;  %v1540_v31 = vld [vmem:[#allocation3 + $0x1f8] sm:$0xff]  ;;  %v1544_v32 = vld [vmem:[#allocation3 + $0x80] sm:$0xff]  ;;  %1951 = vst [vmem:[#allocation15_spill] sm:$0xff] %v1557_v36  ;;  %v1559_v37 = vld [vmem:[#allocation3 + $0x50] sm:$0xff] }
  0x1b   : > { %460 = vmatpush.msra.mxu3 %v1504_v21  ;;  %400 = vmatpush.msra.mxu1 %v1511_v23  ;;  %1950 = vst [vmem:[#allocation14_spill] sm:$0xff] %v1540_v31  ;;  %v1546_v33 = vld [vmem:[#allocation3 + $0x58] sm:$0xff]  ;;  %v1561_v38 = vld [vmem:[#allocation3 + $0x120] sm:$0xff]  ;;  %v1565_v39 = vld [vmem:[#allocation3 + $0x1b0] sm:$0xff] }
  0x1c   : > { %374 = vmatpush.msra.mxu0 %v1501_v20  ;;  %431 = vmatpush.msra.mxu2 %v1509_v22  ;;  %v1551_v35 = vld [vmem:[#allocation3 + $0x1b8] sm:$0xff]  ;;  %v1569_v40 = vld [vmem:[#allocation3 + $0x1e8] sm:$0xff]  ;;  %v1581_v44 = vld [vmem:[#allocation3 + $0x1e0] sm:$0xff] }
  0x1d   : > { %461 = vmatpush.msra.mxu3 %v1521_v25  ;;  %401 = vmatpush.msra.mxu1 %v1546_v33  ;;  %1952 = vst [vmem:[#allocation16_spill] sm:$0xff] %v1569_v40  ;;  %v1571_v41 = vld [vmem:[#allocation3 + $0x48] sm:$0xff]  ;;  %v1573_v42 = vld [vmem:[#allocation3 + $0x118] sm:$0xff]  ;;  %v1583_v45 = vld [vmem:[#allocation3 + $0x40] sm:$0xff] }
  0x1e   : > { %375 = vmatpush.msra.mxu0 %v1518_v24  ;;  %432 = vmatpush.msra.mxu2 %v1528_v27  ;;  %v1577_v43 = vld [vmem:[#allocation3 + $0x1a8] sm:$0xff]  ;;  %1953 = vst [vmem:[#allocation17_spill] sm:$0xff] %v1581_v44  ;;  %v1585_v46 = vld [vmem:[#allocation3 + $0x110] sm:$0xff]  ;;  %v1591_v47 = vld [vmem:[#allocation3 + $0x1a0] sm:$0xff] }
  0x1f   : > { %462 = vmatpush.msra.mxu3 %v1531_v28  ;;  %1262 = vmatmul.msk.f32.vlgmr.msra.gmra.mxu0 %vm356_vm0, %v1534_v29  ;;  %v1593_v48 = vld [vmem:[#allocation3 + $0x1d8] sm:$0xff]  ;;  %v1595_v49 = vld [vmem:[#allocation3 + $0x108] sm:$0xff]  ;;  %v1606_v52 = vld [vmem:[#allocation3 + $0x100] sm:$0xff] }
  0x20   : > { %484 = vmatpush.msrb.mxu0 %v1525_v26  ;;  %433 = vmatpush.msra.mxu2 %v1544_v32  ;;  %1954 = vst [vmem:[#allocation18_spill] sm:$0xff] %v1593_v48  ;;  %v1602_v50 = vld [vmem:[#allocation3 + $0x178] sm:$0xff]  ;;  %v1610_v53 = vld [vmem:[#allocation3 + $0x1d0] sm:$0xff]  ;;  %v1627_v58 = vld [vmem:[#allocation3 + $0x1c8] sm:$0xff] }
  0x21   : > { %571 = vmatpush.msrb.mxu3 %v1540_v31  ;;  %402 = vmatpush.msra.mxu1 %v1559_v37  ;;  %v1604_v51 = vld [vmem:[#allocation3 + $0x198] sm:$0xff]  ;;  %1956 = vst [vmem:[#allocation20_spill] sm:$0xff] %v1610_v53  ;;  %v1617_v55 = vld [vmem:[#allocation3 + $0x170] sm:$0xff]  ;;  %v1631_v59 = vld [vmem:[#allocation3 + $0x168] sm:$0xff] }
  0x22   : > { %485 = vmatpush.msrb.mxu0 %v1537_v30  ;;  %542 = vmatpush.msrb.mxu2 %v1551_v35  ;;  %1955 = vst [vmem:[#allocation19_spill] sm:$0xff] %v1604_v51  ;;  %v1613_v54 = vld [vmem:[#allocation3 + $0x238] sm:$0xff]  ;;  %v1621_v56 = vld [vmem:[#allocation3 + $0x190] sm:$0xff]  ;;  %v1633_v60 = vld [vmem:[#allocation3 + $0x188] sm:$0xff] }
  0x23   : > { %572 = vmatpush.msrb.mxu3 %v1557_v36  ;;  %403 = vmatpush.msra.mxu1 %v1571_v41  ;;  %1957 = vst [vmem:[#allocation21_spill] sm:$0xff] %v1621_v56  ;;  %v1624_v57 = vld [vmem:[#allocation3 + $0x230] sm:$0xff]  ;;  %v1635_v61 = vld [vmem:[#allocation3 + $0x228] sm:$0xff]  ;;  %v1640_v62 = vld [vmem:[#allocation3 + $0x1c0] sm:$0xff] }
  0x24   : > { %486 = vmatpush.msrb.mxu0 %v1548_v34  ;;  %543 = vmatpush.msrb.mxu2 %v1565_v39  ;;  %1958 = vst [vmem:[#allocation22_spill] sm:$0xff] %v1627_v58  ;;  %v1644_v63 = vld [vmem:[#allocation3 + $0x160] sm:$0xff]  ;;  %v1675_v36 = vld [vmem:[#allocation3 + $0x148] sm:$0xff] }
  0x25   : > { %573 = vmatpush.msrb.mxu3 %v1569_v40  ;;  %404 = vmatpush.msra.mxu1 %v1583_v45  ;;  %1959 = vst [vmem:[#allocation23_spill] sm:$0xff] %v1633_v60  ;;  %v1646_v0 = vld [vmem:[#allocation3 + $0x220] sm:$0xff]  ;;  %v1673_v40 = vld [vmem:[#allocation3 + $0x208] sm:$0xff] }
  0x26   : > { %487 = vmatpush.msrb.mxu0 %v1561_v38  ;;  %544 = vmatpush.msrb.mxu2 %v1577_v43  ;;  %1960 = vst [vmem:[#allocation24_spill] sm:$0xff] %v1640_v62  ;;  %v1680_v31 = vld [vmem:[#allocation3 + $0x200] sm:$0xff] }
  0x27   : > { %574 = vmatpush.msrb.mxu3 %v1581_v44  ;;  %1264 = vmatmul.msk.f32.vlgmr.msra.gmra.mxu2 %vm356_vm0, %v1534_v29  ;;  %1961 = vst [vmem:[#allocation25_spill] sm:$0xff] %v1644_v63  ;;  %v1663_v44 = vld [vmem:[#allocation3 + $0x210] sm:$0xff] }
  0x28   : > { %488 = vmatpush.msrb.mxu0 %v1573_v42  ;;  %1265 = vmatmul.msk.f32.vlgmr.msra.gmra.mxu3 %vm356_vm0, %v1534_v29  ;;  %1963 = vst [vmem:[#allocation27_spill] sm:$0xff] %v1663_v44 }
  0x29   : > { %545 = vmatpush.msrb.mxu2 %v1591_v47  ;;  %575 = vmatpush.msrb.mxu3 %v1593_v48  ;;  %v1654_v48 = vld [vmem:[#allocation3 + $0x218] sm:$0xff]  ;;  %1964 = vst [vmem:[#allocation28_spill] sm:$0xff] %v1673_v40 }
  0x2a   : > { %489 = vmatpush.msrb.mxu0 %v1585_v46  ;;  %513 = vmatpush.msrb.mxu1 %v1602_v50  ;;  %1965 = vst [vmem:[#allocation29_spill] sm:$0xff] %v1680_v31 }
  0x2b   : > { %546 = vmatpush.msrb.mxu2 %v1604_v51  ;;  %576 = vmatpush.msrb.mxu3 %v1610_v53  ;;  %v1650_v53 = vld [vmem:[#allocation3 + $0x180] sm:$0xff] }
  0x2c   : > { %490 = vmatpush.msrb.mxu0 %v1595_v49  ;;  %514 = vmatpush.msrb.mxu1 %v1617_v55  ;;  %1962 = vst [vmem:[#allocation26_spill] sm:$0xff] %v1650_v53 }
  0x2d   : > { %547 = vmatpush.msrb.mxu2 %v1621_v56  ;;  %577 = vmatpush.msrb.mxu3 %v1627_v58  ;;  %v1659_v58 = vld [vmem:[#allocation3 + $0x158] sm:$0xff] }
  0x2e   : > { %491 = vmatpush.msrb.mxu0 %v1606_v52  ;;  %515 = vmatpush.msrb.mxu1 %v1631_v59 }
  0x2f   : > { %1266 = vmatmul.msk.f32.vlgmr.msrb.gmra.mxu0 %vm356_vm0, %v1534_v29  ;;  %548 = vmatpush.msrb.mxu2 %v1633_v60 }
  0x30   : > { %600 = vmatpush.msra.mxu0 %v1613_v54  ;;  %578 = vmatpush.msrb.mxu3 %v1640_v62  ;;  %v1669_v62 = vld [vmem:[#allocation3 + $0x150] sm:$0xff] }
  0x31   : > { %1269 = vmatmul.msk.f32.vlgmr.msrb.gmra.mxu3 %vm356_vm0, %v1534_v29  ;;  %516 = vmatpush.msrb.mxu1 %v1644_v63  ;;  %v1682_v63 = vld [vmem:[#allocation3 + $0x140] sm:$0xff] }
  0x32   : > { %601 = vmatpush.msra.mxu0 %v1624_v57  ;;  %549 = vmatpush.msrb.mxu2 %v1650_v53 }
  0x33   : > { %1263 = vmatmul.msk.f32.vlgmr.msra.gmra.mxu1 %vm356_vm0, %v1534_v29  ;;  %1268 = vmatmul.msk.f32.vlgmr.msrb.gmra.mxu2 %vm356_vm0, %v1534_v29 }
  0x34   : > { %602 = vmatpush.msra.mxu0 %v1635_v61  ;;  %517 = vmatpush.msrb.mxu1 %v1659_v58 }
  0x35   : > { %718 = vmatpush.msra.mxu3 %v1445_v1 }
  0x36   : > { %603 = vmatpush.msra.mxu0 %v1646_v0  ;;  %518 = vmatpush.msrb.mxu1 %v1669_v62 }
  0x37   : > { %719 = vmatpush.msra.mxu3 %v1447_v2 }
  0x38   : > { %604 = vmatpush.msra.mxu0 %v1654_v48  ;;  %519 = vmatpush.msrb.mxu1 %v1675_v36 }
  0x39   : > { %720 = vmatpush.msra.mxu3 %v1451_v3 }
  0x3a   : > { %605 = vmatpush.msra.mxu0 %v1663_v44  ;;  %520 = vmatpush.msrb.mxu1 %v1682_v63 }
  0x3b   : > { %1267 = vmatmul.msk.f32.vlgmr.msrb.gmra.mxu1 %vm356_vm0, %v1534_v29  ;;  %721 = vmatpush.msra.mxu3 %v1463_v8 }
  0x3c   : > { %606 = vmatpush.msra.mxu0 %v1673_v40 }
  0x3d   : > { %722 = vmatpush.msra.mxu3 %v1475_v11 }
  0x3e   : > { %607 = vmatpush.msra.mxu0 %v1680_v31 }
  0x3f   : > { %1270 = vmatmul.msk.f32.vlgmr.msra.gmra.mxu0 %vm356_vm0, %v1534_v29  ;;  %723 = vmatpush.msra.mxu3 %v1486_v15 }
  0x40   : > { %758 = vmatpush.msrb.mxu0 %v1455_v5 }
  0x41   : > { %724 = vmatpush.msra.mxu3 %v1501_v20 }
  0x42   : > { %759 = vmatpush.msrb.mxu0 %v1461_v7 }
  0x43   : > { %725 = vmatpush.msra.mxu3 %v1518_v24 }
  0x44   : > { %760 = vmatpush.msrb.mxu0 %v1473_v10 }
  0x45   : > { %778 = vmatpush.msrb.mxu3 %v1453_v4 }
  0x46   : > { %761 = vmatpush.msrb.mxu0 %v1484_v14 }
  0x47   : > { %779 = vmatpush.msrb.mxu3 %v1459_v6 }
  0x48   : > { %762 = vmatpush.msrb.mxu0 %v1497_v18 }
  0x49   : > { %780 = vmatpush.msrb.mxu3 %v1466_v9 }
  0x4a   : > { %763 = vmatpush.msrb.mxu0 %v1509_v22 }
  0x4b   : > { %781 = vmatpush.msrb.mxu3 %v1478_v12  ;;  %v1377_v12 = vmov 0  }
  0x4c   : > { %764 = vmatpush.msrb.mxu0 %v1528_v27  ;;  %1321 = vset.pattern.permute.xlu0 %v1377_v12 }
  0x4d   : > { %782 = vmatpush.msrb.mxu3 %v1489_v16  ;;  %1322 = vset.pattern.permute.xlu1 %v1377_v12 }
  0x4e   : > { %765 = vmatpush.msrb.mxu0 %v1544_v32  ;;  %1323 = vset.pattern.permute.xlu2 %v1377_v12  ;;  %v612_v12 = vld [vmem:[%s1901_s2] sm:$0xff] }
  0x4f   : > { %783 = vmatpush.msrb.mxu3 %v1504_v21  ;;  %v637_v21 = vld [vmem:[%s1902_s3] sm:$0xff] }
  0x50   : > { %838 = vmatpush.msra.mxu0 %v1551_v35  ;;  %640 = vperm.xlu0 %1321, %v637_v21  }
  0x51   : > { %784 = vmatpush.msrb.mxu3 %v1521_v25 }
  0x52   : > { %839 = vmatpush.msra.mxu0 %v1565_v39 }
  0x53   : > { %785 = vmatpush.msrb.mxu3 %v1531_v28  ;;  %v1272_v28 = vld [vmem:[%s1902_s3 + $0x8] sm:$0xff] }
  0x54   : > { %840 = vmatpush.msra.mxu0 %v1577_v43 }
  0x56   : > { %841 = vmatpush.msra.mxu0 %v1591_v47 }
  0x58   : > { %842 = vmatpush.msra.mxu0 %v1604_v51  ;;  %648 = vperm.xlu0 %1321, %v1272_v28  }
  0x5a   : > { %843 = vmatpush.msra.mxu0 %v1621_v56 }
  0x5c   : > { %844 = vmatpush.msra.mxu0 %v1633_v60 }
  0x5e   : > { %845 = vmatpush.msra.mxu0 %v1650_v53 }
  0x9c   : > { %v377_v16 = vpop.f32.mrf.mxu0 }
  0xaa   : > { %v435_v6 = vpop.f32.mrf.mxu2 }
  0xab   : > { %v464_v9 = vpop.f32.mrf.mxu3 }
  0xac   : > { %v493_v25 = vpop.f32.mrf.mxu0 }
  0xb0   : > { %v406_v4 = vpop.f32.mrf.mxu1 }
  0xb4   : > { %v580_v60 = vpop.f32.mrf.mxu3 }
  0xb6   : > { %v551_v56 = vpop.f32.mrf.mxu2 }
  0xb8   : > { %v522_v51 = vpop.f32.mrf.mxu1 }
  0xbc   : > { %v609_v53 = vpop.f32.mrf.mxu0 }
  0xbd   : > { %624 = vmatpush.msra.mxu1 %v609_v53  ;;  %v657_v53 = vld [vmem:[%s1903_s4] sm:$0xff] }
  0xbf   : > { %625 = vmatpush.msra.mxu1 %v580_v60 }
  0xc1   : > { %626 = vmatpush.msra.mxu1 %v551_v56 }
  0xc3   : > { %627 = vmatpush.msra.mxu1 %v522_v51 }
  0xc5   : > { %628 = vmatpush.msra.mxu1 %v493_v25 }
  0xc7   : > { %629 = vmatpush.msra.mxu1 %v464_v9 }
  0xc9   : > { %630 = vmatpush.msra.mxu1 %v435_v6 }
  0xcb   : > { %631 = vmatpush.msra.mxu1 %v406_v4  ;;  %v641_v4 = vpop.permute.xlu0 %640 }
  0xcd   : > { %632 = vmatpush.msra.mxu1 %v377_v16 }
  0xce   : > { %1271 = vmatmul.msk.f32.vlgmr.msra.gmra.mxu1 %vm613_vm1, %v612_v12 }
  0xcf   : > { %798 = vmatpush.msrb.mxu1 %v1525_v26 }
  0xd1   : > { %799 = vmatpush.msrb.mxu1 %v1537_v30 }
  0xd3   : > { %800 = vmatpush.msrb.mxu1 %v1548_v34  ;;  %v649_v16 = vpop.permute.xlu0 %648 }
  0xd5   : > { %801 = vmatpush.msrb.mxu1 %v1561_v38 }
  0xd7   : > { %802 = vmatpush.msrb.mxu1 %v1573_v42 }
  0xd9   : > { %803 = vmatpush.msrb.mxu1 %v1585_v46 }
  0xdb   : > { %804 = vmatpush.msrb.mxu1 %v1595_v49 }
  0xdd   : > { %805 = vmatpush.msrb.mxu1 %v1606_v52 }
  0xdf   : > { %878 = vmatpush.msra.mxu1 %v1613_v54 }
  0xe1   : > { %879 = vmatpush.msra.mxu1 %v1624_v57 }
  0xe3   : > { %880 = vmatpush.msra.mxu1 %v1635_v61 }
  0xe5   : > { %881 = vmatpush.msra.mxu1 %v1646_v0 }
  0xe7   : > { %882 = vmatpush.msra.mxu1 %v1654_v48 }
  0xe9   : > { %883 = vmatpush.msra.mxu1 %v1663_v44 }
  0xeb   : > { %884 = vmatpush.msra.mxu1 %v1673_v40 }
  0xed   : > { %885 = vmatpush.msra.mxu1 %v1680_v31 }
 0x14b   : > { %v634_v6 = vpop.f32.mrf.mxu1 }
 0x14c   : > { %v643_v9 = vmul.f32 %v641_v4, %v634_v6 }
 0x14e   : > { %v651_v21 = vadd.f32 %v649_v16, %v643_v9 }
 0x150   : > { %v652_v25 = vmax.f32 %v651_v21, 0.0 }
 0x152   : > { %v653_v28 = vadd.f32 %v652_v25, %v1534_v29  ;;  %v1966_v29 = vld [vmem:[#allocation25_spill] sm:$0xff] }
 0x154   : > { %v654_v51 = vsel %vm356_vm0, %v653_v28, -inf }
 0x155   : > { %655 = vmax.xlane.f32.xlu1 %v654_v51 }
 0x1c8   : > { %v656_v56 = vpop.xlane.xlu1 %655 }
 0x1c9   : > { %677 = vmatpush.msra.mxu2 %v656_v56 }
 0x1ca   : > { %1273 = vmatmul.msk.f32.vlgmr.msra.gmra.mxu2 %vm658_vm2, %v657_v53 }
 0x1cb   : > { %738 = vmatpush.msrb.mxu2 %v1480_v13 }
 0x1cd   : > { %739 = vmatpush.msrb.mxu2 %v1492_v17 }
 0x1cf   : > { %740 = vmatpush.msrb.mxu2 %v1499_v19 }
 0x1d1   : > { %741 = vmatpush.msrb.mxu2 %v1511_v23 }
 0x1d3   : > { %742 = vmatpush.msrb.mxu2 %v1546_v33 }
 0x1d5   : > { %743 = vmatpush.msrb.mxu2 %v1559_v37 }
 0x1d7   : > { %744 = vmatpush.msrb.mxu2 %v1571_v41 }
 0x1d9   : > { %745 = vmatpush.msrb.mxu2 %v1583_v45 }
 0x1db   : > { %818 = vmatpush.msra.mxu2 %v1602_v50 }
 0x1dd   : > { %819 = vmatpush.msra.mxu2 %v1617_v55 }
 0x1df   : > { %820 = vmatpush.msra.mxu2 %v1631_v59 }
 0x1e1   : > { %821 = vmatpush.msra.mxu2 %v1966_v29 }
 0x1e3   : > { %822 = vmatpush.msra.mxu2 %v1659_v58 }
 0x1e5   : > { %823 = vmatpush.msra.mxu2 %v1669_v62 }
 0x1e7   : > { %824 = vmatpush.msra.mxu2 %v1675_v36 }
 0x1e9   : > { %825 = vmatpush.msra.mxu2 %v1682_v63 }
 0x24d   : > { %v679_v60 = vpop.f32.mrf.mxu2 }
 0x24e   : > { %v1274_v12 = vmul.f32 -1.442695, %v679_v60 }
 0x250   : > { %1324 = vpow2.f32 %v1274_v12 }
 0x256   : > { %v1325_v4 = vpop.eup %1324 }
 0x257   : > { %v685_v6 = vadd.f32 1.0, %v1325_v4  ;;  %v1967_v4 = vld [vmem:[#allocation14_spill] sm:$0xff] }
 0x259   : > { %1326 = vrcp.f32 %v685_v6  ;;  %v697_v25 = vand.u32 2147483648, %v685_v6  ;;  %v695_v53 = vand.u32 2147483647, %v685_v6  ;;  %vm691_vm4 = vweird.f32 %v685_v6 }
 0x25b   : > { %v698_v31 = vor.u32 1.1754944e-38, %v697_v25  ;;  %vm696_vm6 = vcmp.eq.f32.partialorder %v695_v53, 8.507059e+37 }
 0x25f   : > { %v1327_v9 = vpop.eup %1326 }
 0x260   : > { %v687_v16 = vmul.f32 %v1327_v9, %v685_v6  ;;  %vm692_vm3 = vweird.f32 %v1327_v9 }
 0x261   : > { %vm693_vm5 = vmor %vm691_vm4, %vm692_vm3 }
 0x262   : > { %v688_v21 = vsub.f32 1.0, %v687_v16 }
 0x264   : > { %v689_v51 = vmul.f32 %v1327_v9, %v688_v21 }
 0x266   : > { %v690_v56 = vadd.f32 %v1327_v9, %v689_v51  ;;  %v1131_v51 = vld [vmem:[%s1906_s7] sm:$0x1] }
 0x268   : > { %v694_v40 = vsel %vm693_vm5, %v1327_v9, %v690_v56 }
 0x269   : > { %v699_v44 = vsel %vm696_vm6, %v698_v31, %v694_v40  ;;  %v1968_v31 = vld [vmem:[#allocation15_spill] sm:$0xff]  ;;  %v1969_v40 = vld [vmem:[#allocation16_spill] sm:$0xff] }
 0x26a   : > { %703 = vperm.xlu1 %1322, %v699_v44   ;;  %v1970_v44 = vld [vmem:[#allocation17_spill] sm:$0xff] }
 0x2dc   : > { %v704_v60 = vpop.permute.xlu1 %703 }
 0x2dd   : > { %v1770_v12 = vmul.f32 %v704_v60, %v653_v28 }
 0x2df   : > { %1275 = vmatmul.msk.f32.vlgmr.msra.gmra.mxu3 %vm356_vm0, %v1770_v12  ;;  %1276 = vmatmul.msk.f32.vlgmr.msrb.gmra.mxu2 %vm356_vm0, %v1770_v12 }
 0x2e0   : > { %1277 = vmatmul.msk.f32.vlgmr.msrb.gmra.mxu0 %vm356_vm0, %v1770_v12  ;;  %1279 = vmatmul.msk.f32.vlgmr.msrb.gmra.mxu1 %vm356_vm0, %v1770_v12 }
 0x2e1   : > { %858 = vmatpush.msra.mxu3 %v1967_v4  ;;  %932 = vmatpush.msrb.mxu0 %v1445_v1  ;;  %v1971_v1 = vld [vmem:[#allocation18_spill] sm:$0xff] }
 0x2e2   : > { %972 = vmatpush.msrb.mxu1 %v1455_v5  ;;  %v1974_v5 = vld [vmem:[#allocation24_spill] sm:$0xff] }
 0x2e3   : > { %859 = vmatpush.msra.mxu3 %v1968_v31  ;;  %933 = vmatpush.msrb.mxu0 %v1447_v2  ;;  %v1972_v2 = vld [vmem:[#allocation20_spill] sm:$0xff] }
 0x2e4   : > { %973 = vmatpush.msrb.mxu1 %v1461_v7  ;;  %v1975_v7 = vld [vmem:[#allocation19_spill] sm:$0xff] }
 0x2e5   : > { %860 = vmatpush.msra.mxu3 %v1969_v40  ;;  %934 = vmatpush.msrb.mxu0 %v1451_v3  ;;  %v1973_v3 = vld [vmem:[#allocation22_spill] sm:$0xff] }
 0x2e6   : > { %974 = vmatpush.msrb.mxu1 %v1473_v10  ;;  %v1977_v10 = vld [vmem:[#allocation23_spill] sm:$0xff] }
 0x2e7   : > { %861 = vmatpush.msra.mxu3 %v1970_v44  ;;  %1280 = vmatmul.msk.f32.vlgmr.msra.gmra.mxu2 %vm356_vm0, %v1770_v12 }
 0x2e8   : > { %1278 = vmatmul.msk.f32.vlgmr.msrb.gmra.mxu3 %vm356_vm0, %v1770_v12  ;;  %1281 = vmatmul.msk.f32.vlgmr.msra.gmra.mxu0 %vm356_vm0, %v1770_v12 }
 0x2e9   : > { %1283 = vmatmul.msk.f32.vlgmr.msra.gmra.mxu1 %vm356_vm0, %v1770_v12  ;;  %862 = vmatpush.msra.mxu3 %v1971_v1 }
 0x2ea   : > { %935 = vmatpush.msrb.mxu0 %v1463_v8  ;;  %975 = vmatpush.msrb.mxu1 %v1484_v14  ;;  %v1976_v8 = vld [vmem:[#allocation21_spill] sm:$0xff] }
 0x2eb   : > { %863 = vmatpush.msra.mxu3 %v1972_v2 }
 0x2ec   : > { %936 = vmatpush.msrb.mxu0 %v1475_v11  ;;  %976 = vmatpush.msrb.mxu1 %v1497_v18  ;;  %v1978_v11 = vld [vmem:[#allocation26_spill] sm:$0xff]  ;;  %v1132_v18 = vld [vmem:[#allocation2] sm:$0x1] }
 0x2ed   : > { %864 = vmatpush.msra.mxu3 %v1973_v3 }
 0x2ee   : > { %937 = vmatpush.msrb.mxu0 %v1486_v15  ;;  %977 = vmatpush.msrb.mxu1 %v1509_v22  ;;  %v891_v15 = vld [vmem:[%s1905_s6] sm:$0x3] }
 0x2ef   : > { %865 = vmatpush.msra.mxu3 %v1974_v5  ;;  %894 = vperm.xlu2 %1323, %v891_v15  }
 0x2f0   : > { %1282 = vmatmul.msk.f32.vlgmr.msra.gmra.mxu3 %vm356_vm0, %v1770_v12  ;;  %938 = vmatpush.msrb.mxu0 %v1501_v20 }
 0x2f1   : > { %952 = vmatpush.msrb.mxu3 %v1480_v13  ;;  %978 = vmatpush.msrb.mxu1 %v1528_v27  ;;  %v890_v27 = vld [vmem:[%s1904_s5] sm:$0x3] }
 0x2f2   : > { %939 = vmatpush.msrb.mxu0 %v1518_v24 }
 0x2f3   : > { %953 = vmatpush.msrb.mxu3 %v1492_v17  ;;  %979 = vmatpush.msrb.mxu1 %v1544_v32  ;;  %v1980_v32 = vld [vmem:[#allocation7_spill] sm:$0xff] }
 0x2f4   : > { %1012 = vmatpush.msra.mxu0 %v1525_v26 }
 0x2f5   : > { %954 = vmatpush.msrb.mxu3 %v1499_v19  ;;  %1052 = vmatpush.msra.mxu1 %v1551_v35  ;;  %v1983_v35 = vld [vmem:[#allocation10_spill] sm:$0xff] }
 0x2f6   : > { %1013 = vmatpush.msra.mxu0 %v1537_v30  ;;  %v1979_v30 = vld [vmem:[#allocation6_spill] sm:$0xff] }
 0x2f7   : > { %955 = vmatpush.msrb.mxu3 %v1511_v23  ;;  %1053 = vmatpush.msra.mxu1 %v1565_v39 }
 0x2f8   : > { %1014 = vmatpush.msra.mxu0 %v1548_v34  ;;  %1135 = vperm.xlu2 %1323, %v1132_v18   ;;  %v1982_v34 = vld [vmem:[#allocation9_spill] sm:$0xff] }
 0x2f9   : > { %956 = vmatpush.msrb.mxu3 %v1546_v33  ;;  %1054 = vmatpush.msra.mxu1 %v1577_v43  ;;  %v1981_v33 = vld [vmem:[#allocation8_spill] sm:$0xff] }
 0x2fa   : > { %1015 = vmatpush.msra.mxu0 %v1561_v38  ;;  %v1986_v38 = vld [vmem:[#allocation13_spill] sm:$0xff] }
 0x2fb   : > { %957 = vmatpush.msrb.mxu3 %v1559_v37  ;;  %1055 = vmatpush.msra.mxu1 %v1591_v47  ;;  %v1985_v37 = vld [vmem:[#allocation12_spill] sm:$0xff]  ;;  %v1989_v47 = vld [vmem:[#allocation29_spill] sm:$0xff] }
 0x2fc   : > { %1016 = vmatpush.msra.mxu0 %v1573_v42 }
 0x2fd   : > { %958 = vmatpush.msrb.mxu3 %v1571_v41  ;;  %1056 = vmatpush.msra.mxu1 %v1975_v7 }
 0x2fe   : > { %1017 = vmatpush.msra.mxu0 %v1585_v46  ;;  %v1988_v46 = vld [vmem:[#allocation28_spill] sm:$0xff] }
 0x2ff   : > { %959 = vmatpush.msrb.mxu3 %v1583_v45  ;;  %1057 = vmatpush.msra.mxu1 %v1976_v8  ;;  %v1987_v45 = vld [vmem:[#allocation27_spill] sm:$0xff] }
 0x300   : > { %1018 = vmatpush.msra.mxu0 %v1595_v49 }
 0x301   : > { %1032 = vmatpush.msra.mxu3 %v1602_v50  ;;  %1058 = vmatpush.msra.mxu1 %v1977_v10 }
 0x302   : > { %1019 = vmatpush.msra.mxu0 %v1606_v52 }
 0x303   : > { %1033 = vmatpush.msra.mxu3 %v1617_v55  ;;  %1059 = vmatpush.msra.mxu1 %v1978_v11 }
 0x305   : > { %1034 = vmatpush.msra.mxu3 %v1631_v59 }
 0x307   : > { %1035 = vmatpush.msra.mxu3 %v1966_v29 }
 0x309   : > { %1036 = vmatpush.msra.mxu3 %v1659_v58 }
 0x30b   : > { %1037 = vmatpush.msra.mxu3 %v1669_v62 }
 0x30d   : > { %1038 = vmatpush.msra.mxu3 %v1675_v36  ;;  %v1984_v36 = vld [vmem:[#allocation11_spill] sm:$0xff] }
 0x30f   : > { %1039 = vmatpush.msra.mxu3 %v1682_v63 }
 0x349   : > { %v895_v39 = vpop.permute.xlu2 %894 }
 0x352   : > { %v1136_v56 = vpop.permute.xlu2 %1135 }
 0x353   : > { %v1138_v60 = vperm.slane %v1136_v56, 0 }
 0x35d   : > { %v807_v13 = vpop.f32.mrf.mxu1  ;;  %v767_v19 = vpop.f32.mrf.mxu0 }
 0x362   : > { %v727_v14 = vpop.f32.mrf.mxu3  ;;  %v747_v22 = vpop.f32.mrf.mxu2 }
 0x365   : > { %v847_v24 = vpop.f32.mrf.mxu0 }
 0x366   : > { %v887_v17 = vpop.f32.mrf.mxu1 }
 0x367   : > { %907 = vmatpush.msrb.mxu2 %v887_v17 }
 0x36a   : > { %v827_v26 = vpop.f32.mrf.mxu2 }
 0x36b   : > { %v787_v20 = vpop.f32.mrf.mxu3 }
 0x373   : > { %v867_v23 = vpop.f32.mrf.mxu3 }
 0x374   : > { %908 = vmatpush.msrb.mxu2 %v867_v23 }
 0x376   : > { %909 = vmatpush.msrb.mxu2 %v847_v24 }
 0x378   : > { %910 = vmatpush.msrb.mxu2 %v827_v26 }
 0x37a   : > { %911 = vmatpush.msrb.mxu2 %v807_v13 }
 0x37c   : > { %912 = vmatpush.msrb.mxu2 %v787_v20 }
 0x37e   : > { %913 = vmatpush.msrb.mxu2 %v767_v19 }
 0x380   : > { %914 = vmatpush.msrb.mxu2 %v747_v22 }
 0x382   : > { %915 = vmatpush.msrb.mxu2 %v727_v14 }
 0x383   : > { %1284 = vmatmul.msk.f32.vlgmr.msrb.gmra.mxu2 %vm613_vm1, %v890_v27 }
 0x384   : > { %992 = vmatpush.msra.mxu2 %v1979_v30 }
 0x386   : > { %993 = vmatpush.msra.mxu2 %v1980_v32 }
 0x388   : > { %994 = vmatpush.msra.mxu2 %v1981_v33 }
 0x38a   : > { %995 = vmatpush.msra.mxu2 %v1982_v34 }
 0x38c   : > { %996 = vmatpush.msra.mxu2 %v1983_v35 }
 0x38e   : > { %997 = vmatpush.msra.mxu2 %v1984_v36 }
 0x390   : > { %998 = vmatpush.msra.mxu2 %v1985_v37 }
 0x392   : > { %999 = vmatpush.msra.mxu2 %v1986_v38 }
 0x394   : > { %1072 = vmatpush.msrb.mxu2 %v1967_v4 }
 0x396   : > { %1073 = vmatpush.msrb.mxu2 %v1968_v31 }
 0x398   : > { %1074 = vmatpush.msrb.mxu2 %v1969_v40 }
 0x39a   : > { %1075 = vmatpush.msrb.mxu2 %v1970_v44 }
 0x39c   : > { %1076 = vmatpush.msrb.mxu2 %v1971_v1 }
 0x39e   : > { %1077 = vmatpush.msrb.mxu2 %v1972_v2 }
 0x3a0   : > { %1078 = vmatpush.msrb.mxu2 %v1973_v3 }
 0x3a2   : > { %1079 = vmatpush.msrb.mxu2 %v1974_v5 }
 0x406   : > { %v917_v41 = vpop.f32.mrf.mxu2 }
 0x407   : > { %v918_v42 = vadd.f32 %v917_v41, %v895_v39 }
 0x409   : > { %v920_v43 = vmax.f32 %v918_v42, 0.0 }
 0x40b   : > { %1285 = vmatmul.msk.f32.vlgmr.msrb.gmra.mxu0 %vm356_vm0, %v920_v43  ;;  %1286 = vmatmul.msk.f32.vlgmr.msrb.gmra.mxu3 %vm356_vm0, %v920_v43 }
 0x40c   : > { %1287 = vmatmul.msk.f32.vlgmr.msrb.gmra.mxu1 %vm356_vm0, %v920_v43  ;;  %1288 = vmatmul.msk.f32.vlgmr.msra.gmra.mxu2 %vm356_vm0, %v920_v43 }
 0x40d   : > { %1092 = vmatpush.msrb.mxu0 %v1613_v54 }
 0x40f   : > { %1093 = vmatpush.msrb.mxu0 %v1624_v57 }
 0x411   : > { %1094 = vmatpush.msrb.mxu0 %v1635_v61 }
 0x413   : > { %1095 = vmatpush.msrb.mxu0 %v1646_v0  ;;  %1290 = vmatmul.msk.f32.vlgmr.msra.gmra.mxu3 %vm356_vm0, %v920_v43 }
 0x414   : > { %1289 = vmatmul.msk.f32.vlgmr.msra.gmra.mxu0 %vm356_vm0, %v920_v43  ;;  %1291 = vmatmul.msk.f32.vlgmr.msra.gmra.mxu1 %vm356_vm0, %v920_v43 }
 0x415   : > { %1292 = vmatmul.msk.f32.vlgmr.msrb.gmra.mxu2 %vm356_vm0, %v920_v43  ;;  %1096 = vmatpush.msrb.mxu0 %v1654_v48 }
 0x417   : > { %1097 = vmatpush.msrb.mxu0 %v1987_v45 }
 0x419   : > { %1098 = vmatpush.msrb.mxu0 %v1988_v46 }
 0x41b   : > { %1099 = vmatpush.msrb.mxu0 %v1989_v47 }
 0x41c   : > { %1293 = vmatmul.msk.f32.vlgmr.msrb.gmra.mxu0 %vm356_vm0, %v920_v43 }
 0x488   : > { %v941_v49 = vpop.f32.mrf.mxu0 }
 0x489   : > { %v981_v50 = vpop.f32.mrf.mxu1 }
 0x48a   : > { %v1108_v48 = vrot.slane %v981_v50, 4 }
 0x48e   : > { %v961_v52 = vpop.f32.mrf.mxu3 }
 0x48f   : > { %v1001_v54 = vpop.f32.mrf.mxu2  ;;  %v1105_v57 = vrot.slane %v961_v52, 6 }
 0x490   : > { %v1111_v21 = vrot.slane %v1001_v54, 2 }
 0x491   : > { %v1021_v55 = vpop.f32.mrf.mxu0  ;;  %v1061_v58 = vpop.f32.mrf.mxu1  ;;  %v1123_v61 = vsel %vm1122_vm7, %v941_v49, %v1105_v57 }
 0x492   : > { %v1117_v63 = vrot.slane %v1061_v58, 4  ;;  %v1125_v16 = vsel %vm1124_vm8, %v1123_v61, %v1108_v48 }
 0x493   : > { %v1127_v53 = vsel %vm1126_vm9, %v1125_v16, %v1111_v21 }
 0x496   : > { %v1041_v59 = vpop.f32.mrf.mxu3 }
 0x497   : > { %v1114_v62 = vrot.slane %v1041_v59, 6 }
 0x498   : > { %v1081_v0 = vpop.f32.mrf.mxu2 }
 0x499   : > { %v1128_v28 = vsel %vm1122_vm7, %v1021_v55, %v1114_v62  ;;  %v1120_v29 = vrot.slane %v1081_v0, 2  ;;  %v1101_v6 = vpop.f32.mrf.mxu0 }
 0x49a   : > { %1294 = vmatpush.msk.msrb.mxu3 %vm1122_vm7, %v1101_v6  ;;  %v1129_v9 = vsel %vm1124_vm8, %v1128_v28, %v1117_v63 }
 0x49b   : > { %v1130_v25 = vsel %vm1126_vm9, %v1129_v9, %v1120_v29 }
 0x49c   : > { %1160 = vmatpush.msrb.mxu3 %v1130_v25 }
 0x49e   : > { %1161 = vmatpush.msrb.mxu3 %v1127_v53 }
 0x49f   : > { %1295 = vmatmul.msk.f32.vlgmr.msrb.gmra.mxu3 %vm1139_vm10, %v1131_v51 }
 0x522   : > { %v1163_v4 = vpop.f32.mrf.mxu3 }
 0x523   : > { %v1164_v31 = vadd.f32 %v1163_v4, %v1138_v60 }
 0x525   : > { %v1296_v40 = vmul.f32 -1.442695, %v1164_v31 }
 0x527   : > { %1328 = vpow2.f32 %v1296_v40 }
 0x52d   : > { %v1329_v44 = vpop.eup %1328 }
 0x52e   : > { %v1169_v1 = vadd.f32 1.0, %v1329_v44 }
 0x530   : > { %1330 = vrcp.f32 %v1169_v1  ;;  %v1181_v7 = vand.u32 2147483648, %v1169_v1  ;;  %v1179_v10 = vand.u32 2147483647, %v1169_v1  ;;  %vm1175_vm12 = vweird.f32 %v1169_v1 }
 0x532   : > { %v1182_v13 = vor.u32 1.1754944e-38, %v1181_v7  ;;  %vm1180_vm14 = vcmp.eq.f32.partialorder %v1179_v10, 8.507059e+37 }
 0x536   : > { %v1331_v2 = vpop.eup %1330 }
 0x537   : > { %v1171_v3 = vmul.f32 %v1331_v2, %v1169_v1  ;;  %vm1176_vm11 = vweird.f32 %v1331_v2 }
 0x538   : > { %vm1177_vm13 = vmor %vm1175_vm12, %vm1176_vm11 }
 0x539   : > { %v1172_v5 = vsub.f32 1.0, %v1171_v3 }
 0x53b   : > { %v1173_v8 = vmul.f32 %v1331_v2, %v1172_v5 }
 0x53d   : > { %v1174_v11 = vadd.f32 %v1331_v2, %v1173_v8 }
 0x53f   : > { %v1178_v14 = vsel %vm1177_vm13, %v1331_v2, %v1174_v11 }
 0x540   : > { %v1183_v15 = vsel %vm1180_vm14, %v1182_v13, %v1178_v14 }
 0x541   : > { %v1185_v17 = vperm.slane %v1183_v15, 0 }
 0x543   : > { %v1186_v18 = vmul.f32 %v1185_v17, %v1770_v12 }
 0x545   : > { %1187 = vst.msk [vmem:[%s346_s20] sm:$0xff] %vm356_vm0, %v1186_v18 }
 0x546 PF: > { %s22_s11 = sadd.s32 1, %s1372_s11  }
 0x547   : > { %p19_p7 = scmp.ge.s32.totalorder %s22_s11, 4  }
 0x549   :  { %21 = sbr.rel (!%p19_p7) target bundleno = 4 (0x4), region = 100 }
 0x54e   :  { %1207 = vsyncpa [#allocation4], 1 }
 0x54f   :  { %1209 = vsyncpa [#allocation4 + $0x1], 1 }

</bundles_post_ra>
